<compile_context>
chip_gen: v5e
topology: v5e:2x2
jax: 0.10.0
libtpu: 0.0.40
codegen_flags: <defaults>
</compile_context>

<pallas_src>
import numpy as np
import jax
import jax.numpy as jnp
from jax.experimental import pallas as pl
from jax.experimental.pallas import tpu as pltpu


def pnn_kernel(x_ref, label_ref, lr_ref, m_ref, w1a_ref, b1_ref,
               w2_ref, b2_ref, w3_ref, b3_ref, w4t_ref, b4_ref, out_ref):
    x = x_ref[...]                                                   # [BT, F*D] bf16

    # ---- InnerProductLayer(output='inner_product') -------------------------
    # Fused left|right pair selection: ONE wide bf16 MXU pass.  Column p*D+d of
    # the left half selects field i of pair p, of the right half field j.
    sel = jnp.dot(x, lr_ref[...], preferred_element_type=jnp.float32)  # [BT, 2*PDp] f32
    pdp = sel.shape[1] // 2
    # Elementwise product in f32 (exact; v5e has no bf16 VALU), bf16 for the MXU.
    prod = (sel[:, :pdp] * sel[:, pdp:]).astype(jnp.bfloat16)          # [BT, PDp]

    # ---- MLP_Layer(hidden=[64,64,64], relu) + Linear(1) ---------------------
    # concat([x, ip], 1) @ W1 == x @ W1a + prod @ (S @ W1b); the pair-sum matrix
    # S is folded into W1b on the host (m_ref), so no separate ip matmul.
    h = (jnp.dot(x, w1a_ref[...], preferred_element_type=jnp.float32)
         + jnp.dot(prod, m_ref[...], preferred_element_type=jnp.float32)
         + b1_ref[...])
    h = jnp.maximum(h, 0.0).astype(jnp.bfloat16)
    h = jnp.maximum(jnp.dot(h, w2_ref[...], preferred_element_type=jnp.float32)
                    + b2_ref[...], 0.0).astype(jnp.bfloat16)
    h = jnp.maximum(jnp.dot(h, w3_ref[...], preferred_element_type=jnp.float32)
                    + b3_ref[...], 0.0).astype(jnp.bfloat16)

    # Final layer: contract h's last dim against w4t's last dim directly (no
    # explicit h.T / XLU transpose).  Output stays a lane-dense [8, BT] slab,
    # row 0 is the real logit.
    logit8 = jax.lax.dot_general(w4t_ref[...], h, (((1,), (1,)), ((), ())),
                                 preferred_element_type=jnp.float32)   # [8, BT]
    logit = logit8[0:1, :] + b4_ref[0, 0]                              # [1, BT]
    pred = jax.nn.sigmoid(logit)

    # ---- torch.nn.BCELoss() per example (log clamped at -100) --------------
    # The mean over the TRUE batch is taken in JAX (keeps the grid "parallel"
    # and handles a ragged last tile exactly).
    y = label_ref[0]                                                   # [1, BT]
    log_p = jnp.maximum(jnp.log(pred), -100.0)
    log_1mp = jnp.maximum(jnp.log(1.0 - pred), -100.0)
    bce = -(y * log_p + (1.0 - y) * log_1mp)

    # Merged lane-dense output: row 0 = pred, row 1 = per-example BCE.
    out_ref[0, 0:1, :] = pred
    out_ref[0, 1:2, :] = bce


def round_up(x, m):
    return ((x + m - 1) // m) * m


def pad2(a, rows, cols, dtype=jnp.float32):
    a = jnp.asarray(a, dtype)
    return jnp.zeros((rows, cols), dtype).at[: a.shape[0], : a.shape[1]].set(a)


def build_lr_matrix(num_fields, emb_dim, pd_pad):
    # Upper-triangular (i < j) pair order matches torch.triu_indices(F, F, 1):
    # (0,1),(0,2),...,(0,F-1),(1,2),...
    pairs = [(i, j) for i in range(num_fields) for j in range(i + 1, num_fields)]
    D = emb_dim
    fd = num_fields * D
    LR = np.zeros((fd, 2 * pd_pad), np.float32)    # fused [L | R] selection
    for p, (i, j) in enumerate(pairs):
        for d in range(D):
            LR[i * D + d, p * D + d] = 1.0              # left  half -> field i
            LR[j * D + d, pd_pad + p * D + d] = 1.0     # right half -> field j
    # LR holds exact 0/1 values -> bf16 is lossless.
    return jnp.asarray(LR, jnp.bfloat16), pairs


def build_folded_w1b(w1b_bf, num_pairs, emb_dim, pd_pad, h_pad):
    # M = S @ W1b: row p*D+d of M is row p of W1b (pair-sum folded into W1b).
    H = w1b_bf.shape[1]
    m_full = np.zeros((pd_pad, h_pad), np.float32)
    w1b_np = np.asarray(w1b_bf, np.float32)
    for p in range(num_pairs):
        m_full[p * emb_dim:(p + 1) * emb_dim, :H] = w1b_np[p]
    return m_full


def pnn_forward(emb, label, consts, params, *, block_b=512):
    """emb: [B, F, D] bf16, label: [B] f32.  Returns {"pred": [B,1] f32, "loss": scalar}."""
    B, F, D = emb.shape
    FD = F * D
    b_pad = round_up(B, block_b)
    n_tiles = b_pad // block_b
    # NOTE: on v7x pick block_b so n_tiles is even and >=2 (2 TensorCores share
    # the "parallel" batch axis); ideally block_b | B so no pad pre-pass runs.

    # Stream the flattened embeddings at their natural lane width FD (== full
    # last dim, so the (8,128) rule holds) — no host-side 80->128 pad rewrite.
    x = emb.reshape(B, FD).astype(jnp.bfloat16)
    lbl = label.astype(jnp.float32)
    if b_pad != B:
        x = jnp.pad(x, ((0, b_pad - B), (0, 0)))
        lbl = jnp.pad(lbl, (0, b_pad - B))
    y = lbl.reshape(n_tiles, 1, block_b)

    inputs = (x, y, consts["LR"],
              params["m"], params["w1a"], params["b1"],
              params["w2"], params["b2"], params["w3"], params["b3"],
              params["w4t"], params["b4"])

    def const_spec(arr):
        nd = arr.ndim
        return pl.BlockSpec(arr.shape, lambda i, nd=nd: (0,) * nd)

    in_specs = [
        pl.BlockSpec((block_b, FD), lambda i: (i, 0)),        # streamed emb tile
        pl.BlockSpec((1, 1, block_b), lambda i: (i, 0, 0)),   # label rows
        const_spec(consts["LR"]),                             # fused L|R selection
        const_spec(params["m"]),                              # folded S @ W1b
        const_spec(params["w1a"]),
        const_spec(params["b1"]),
        const_spec(params["w2"]), const_spec(params["b2"]),
        const_spec(params["w3"]), const_spec(params["b3"]),
        const_spec(params["w4t"]),
        pl.BlockSpec(memory_space=pltpu.MemorySpace.SMEM),    # b4 scalar
    ]
    out_specs = pl.BlockSpec((1, 2, block_b), lambda i: (i, 0, 0))
    out_shape = jax.ShapeDtypeStruct((n_tiles, 2, block_b), jnp.float32)

    rows = pl.pallas_call(
        pnn_kernel,
        out_shape=out_shape,
        grid=(n_tiles,),
        in_specs=in_specs,
        out_specs=out_specs,
        compiler_params=pltpu.CompilerParams(
            dimension_semantics=("parallel",)),
    )(*inputs)

    pred = rows[:, 0, :].reshape(b_pad)[:B][:, None]
    loss = jnp.mean(rows[:, 1, :].reshape(b_pad)[:B])   # mean over the TRUE batch
    return {"pred": pred, "loss": loss}


def init_linear(key, fan_in, fan_out):
    # torch.nn.Linear default init: U(-1/sqrt(fan_in), 1/sqrt(fan_in))
    kw, kb = jax.random.split(key)
    bound = 1.0 / np.sqrt(fan_in)
    w = jax.random.uniform(kw, (fan_in, fan_out), jnp.float32, -bound, bound)
    b = jax.random.uniform(kb, (1, fan_out), jnp.float32, -bound, bound)
    return w, b


def pnn_reference(emb_bf16, label, p, pairs):
    # Pure-JAX reference that models the kernel's bf16 quantization exactly
    # (bf16-rounded weights/activations, f32 accumulation).
    f32 = jnp.float32
    emb = emb_bf16.astype(f32)
    B, F, D = emb.shape
    flat = emb.reshape(B, F * D)
    li = jnp.stack([emb[:, i, :] for i, _ in pairs], axis=1)   # [B, P, D]
    rj = jnp.stack([emb[:, j, :] for _, j in pairs], axis=1)   # [B, P, D]
    prod = (li * rj).astype(jnp.bfloat16).astype(f32).reshape(B, -1)   # [B, P*D]
    h = flat @ p["w1a"] + prod @ p["m"] + p["b1"]
    h = jnp.maximum(h, 0.0).astype(jnp.bfloat16).astype(f32)
    h = jnp.maximum(h @ p["w2"] + p["b2"], 0.0).astype(jnp.bfloat16).astype(f32)
    h = jnp.maximum(h @ p["w3"] + p["b3"], 0.0).astype(jnp.bfloat16).astype(f32)
    pred = jax.nn.sigmoid(h @ p["w4"] + p["b4"])
    y = label[:, None]
    log_p = jnp.maximum(jnp.log(pred), -100.0)
    log_1mp = jnp.maximum(jnp.log(1.0 - pred), -100.0)
    loss = jnp.mean(-(y * log_p + (1.0 - y) * log_1mp))
    return pred, loss


if __name__ == "__main__":
    B, F, D, VOCAB = 512, 8, 10, 50            # batch, num_fields, embedding_dim
    HIDDEN = [64, 64, 64]
    H = HIDDEN[0]
    P = F * (F - 1) // 2                       # 28
    FD = F * D                                 # 80
    PD = P * D                                 # 280
    PDp = round_up(PD, 128)                    # 384 (lane-dense pair-product width)
    Hp = round_up(H, 128)                      # 128 (lane-dense hidden width)
    BLOCK_B = 256                              # divides B (no pad pre-pass), 2 even
                                               # tiles for v7x megacore; 512-1024 at prod

    key = jax.random.PRNGKey(0)
    k_emb, k_idx, k_lbl, k1, k2, k3, k4 = jax.random.split(key, 7)

    # ---- EmbeddingLayer (glue, plain JAX gather) ---------------------------
    # TODO(synk): fuse the gather into the kernel (stream [BT, F] int32 ids,
    # keep the small [F, VOCAB, D] tables VMEM-resident) to cut streamed HBM
    # bytes per example ~8x at production batch sizes.
    tables = jax.random.normal(k_emb, (F, VOCAB, D), jnp.float32)     # nn.Embedding ~ N(0,1)
    sparse_ids = jax.random.randint(k_idx, (B, F), 0, VOCAB)          # the `data` dict
    emb = jax.vmap(lambda t, ix: t[ix], in_axes=(0, 1), out_axes=1)(tables, sparse_ids)
    label = jax.random.bernoulli(k_lbl, 0.5, (B,)).astype(jnp.float32)
    emb_bf16 = emb.astype(jnp.bfloat16)        # kernel streams bf16

    # ---- Parameters (deterministic, torch-style init); bf16 MXU operands ----
    input_dim = FD + P                         # 108
    w1, b1 = init_linear(k1, input_dim, H)
    w2, b2 = init_linear(k2, H, H)
    w3, b3 = init_linear(k3, H, H)
    w4, b4 = init_linear(k4, H, 1)

    w1a_bf = w1[:FD].astype(jnp.bfloat16)
    w1b_bf = w1[FD:].astype(jnp.bfloat16)
    w2_bf = w2.astype(jnp.bfloat16)
    w3_bf = w3.astype(jnp.bfloat16)
    w4_bf = w4.astype(jnp.bfloat16)

    m_full = build_folded_w1b(w1b_bf, P, D, PDp, Hp)                  # S @ W1b folded
    w4t = jnp.zeros((8, Hp), jnp.bfloat16).at[0, :H].set(w4_bf[:, 0])

    params = {
        "w1a": pad2(w1a_bf, FD, Hp, jnp.bfloat16),
        "m": jnp.asarray(m_full, jnp.bfloat16),
        "b1": pad2(b1, 1, Hp),
        "w2": pad2(w2_bf, Hp, Hp, jnp.bfloat16), "b2": pad2(b2, 1, Hp),
        "w3": pad2(w3_bf, Hp, Hp, jnp.bfloat16), "b3": pad2(b3, 1, Hp),
        "w4t": w4t, "b4": jnp.asarray(b4, jnp.float32).reshape(1, 1),
    }

    lr_mat, pairs = build_lr_matrix(F, D, PDp)
    consts = {"LR": lr_mat}

    ref_params = {
        "w1a": w1a_bf.astype(jnp.float32),
        "m": jnp.asarray(m_full[:PD, :H], jnp.float32),
        "b1": b1,
        "w2": w2_bf.astype(jnp.float32), "b2": b2,
        "w3": w3_bf.astype(jnp.float32), "b3": b3,
        "w4": w4_bf.astype(jnp.float32), "b4": b4,
    }

    # ---- Run Pallas kernel --------------------------------------------------
    out = pnn_forward(emb_bf16, label, consts, params, block_b=BLOCK_B)
    pred = jax.block_until_ready(out["pred"])
    loss = jax.block_until_ready(out["loss"])

    # ---- Check against pure-JAX reference ----------------------------------
    with jax.default_matmul_precision("highest"):
        ref_pred, ref_loss = pnn_reference(emb_bf16, label, ref_params, pairs)
    np.testing.assert_allclose(np.asarray(pred), np.asarray(ref_pred), rtol=2e-3, atol=2e-3)
    np.testing.assert_allclose(float(loss), float(ref_loss), rtol=2e-3, atol=2e-3)

    print("KERNEL_OK")
</pallas_src>

<mosaic_0001>
module attributes {stable_mosaic.version = 11 : i64} {
  func.func @pnn_kernel(%arg0: i32, %arg1: memref<256x80xbf16, #tpu.memory_space<vmem>>, %arg2: memref<1x1x256xf32, #tpu.memory_space<vmem>>, %arg3: memref<80x768xbf16, #tpu.memory_space<vmem>>, %arg4: memref<384x128xbf16, #tpu.memory_space<vmem>>, %arg5: memref<80x128xbf16, #tpu.memory_space<vmem>>, %arg6: memref<1x128xf32, #tpu.memory_space<vmem>>, %arg7: memref<128x128xbf16, #tpu.memory_space<vmem>>, %arg8: memref<1x128xf32, #tpu.memory_space<vmem>>, %arg9: memref<128x128xbf16, #tpu.memory_space<vmem>>, %arg10: memref<1x128xf32, #tpu.memory_space<vmem>>, %arg11: memref<8x128xbf16, #tpu.memory_space<vmem>>, %arg12: memref<1x1xf32, #tpu.memory_space<smem>>, %arg13: memref<1x2x256xf32, #tpu.memory_space<vmem>>) attributes {dimension_semantics = [#tpu.dimension_semantics<parallel>], iteration_bounds = array<i64: 2>, scalar_prefetch = 0 : i64, scratch_operands = 0 : i64, tpu.core_type = #tpu.core_type<tc>, window_params = [{transform_indices = @transform_0, window_bounds = array<i64: 256, 80>}, {transform_indices = @transform_1, window_bounds = array<i64: 1, 1, 256>}, {pipeline_mode = #tpu.pipeline_mode<synchronous>, transform_indices = @transform_2, window_bounds = array<i64: 80, 768>}, {pipeline_mode = #tpu.pipeline_mode<synchronous>, transform_indices = @transform_3, window_bounds = array<i64: 384, 128>}, {pipeline_mode = #tpu.pipeline_mode<synchronous>, transform_indices = @transform_4, window_bounds = array<i64: 80, 128>}, {pipeline_mode = #tpu.pipeline_mode<synchronous>, transform_indices = @transform_5, window_bounds = array<i64: 1, 128>}, {pipeline_mode = #tpu.pipeline_mode<synchronous>, transform_indices = @transform_6, window_bounds = array<i64: 128, 128>}, {pipeline_mode = #tpu.pipeline_mode<synchronous>, transform_indices = @transform_7, window_bounds = array<i64: 1, 128>}, {pipeline_mode = #tpu.pipeline_mode<synchronous>, transform_indices = @transform_8, window_bounds = array<i64: 128, 128>}, {pipeline_mode = #tpu.pipeline_mode<synchronous>, transform_indices = @transform_9, window_bounds = array<i64: 1, 128>}, {pipeline_mode = #tpu.pipeline_mode<synchronous>, transform_indices = @transform_10, window_bounds = array<i64: 8, 128>}, {transform_indices = @transform_11, window_bounds = array<i64: 1, 1>}, {transform_indices = @transform_12, window_bounds = array<i64: 1, 2, 256>}]} {
    %c0 = arith.constant 0 : index
    %c0_0 = arith.constant 0 : index
    %0 = vector.load %arg1[%c0, %c0_0] : memref<256x80xbf16, #tpu.memory_space<vmem>>, vector<256x80xbf16>
    %c0_1 = arith.constant 0 : index
    %c0_2 = arith.constant 0 : index
    %1 = vector.load %arg3[%c0_1, %c0_2] : memref<80x768xbf16, #tpu.memory_space<vmem>>, vector<80x768xbf16>
    %cst = arith.constant dense<0.000000e+00> : vector<256x768xf32>
    %2 = tpu.matmul %0, %1, %cst {dimension_numbers = #tpu.dot_dimension_numbers<[1], [0], [0], [1], [0, 0, 1, 1], [], []>} : vector<256x80xbf16>, vector<80x768xbf16>, vector<256x768xf32> -> vector<256x768xf32>
    %3 = vector.extract_strided_slice %2 {offsets = [0, 0], sizes = [256, 384], strides = [1, 1]} : vector<256x768xf32> to vector<256x384xf32>
    %4 = vector.extract_strided_slice %2 {offsets = [0, 384], sizes = [256, 384], strides = [1, 1]} : vector<256x768xf32> to vector<256x384xf32>
    %5 = arith.mulf %3, %4 : vector<256x384xf32>
    %6 = arith.truncf %5 : vector<256x384xf32> to vector<256x384xbf16>
    %c0_3 = arith.constant 0 : index
    %c0_4 = arith.constant 0 : index
    %7 = vector.load %arg5[%c0_3, %c0_4] : memref<80x128xbf16, #tpu.memory_space<vmem>>, vector<80x128xbf16>
    %cst_5 = arith.constant dense<0.000000e+00> : vector<256x128xf32>
    %8 = tpu.matmul %0, %7, %cst_5 {dimension_numbers = #tpu.dot_dimension_numbers<[1], [0], [0], [1], [0, 0, 1, 1], [], []>} : vector<256x80xbf16>, vector<80x128xbf16>, vector<256x128xf32> -> vector<256x128xf32>
    %c0_6 = arith.constant 0 : index
    %c0_7 = arith.constant 0 : index
    %9 = vector.load %arg4[%c0_6, %c0_7] : memref<384x128xbf16, #tpu.memory_space<vmem>>, vector<384x128xbf16>
    %cst_8 = arith.constant dense<0.000000e+00> : vector<256x128xf32>
    %10 = tpu.matmul %6, %9, %cst_8 {dimension_numbers = #tpu.dot_dimension_numbers<[1], [0], [0], [1], [0, 0, 1, 1], [], []>} : vector<256x384xbf16>, vector<384x128xbf16>, vector<256x128xf32> -> vector<256x128xf32>
    %11 = arith.addf %8, %10 : vector<256x128xf32>
    %c0_9 = arith.constant 0 : index
    %c0_10 = arith.constant 0 : index
    %12 = vector.load %arg6[%c0_9, %c0_10] : memref<1x128xf32, #tpu.memory_space<vmem>>, vector<1x128xf32>
    %13 = vector.broadcast %12 : vector<1x128xf32> to vector<256x128xf32>
    %14 = arith.addf %11, %13 : vector<256x128xf32>
    %cst_11 = arith.constant 0.000000e+00 : f32
    %15 = vector.broadcast %cst_11 : f32 to vector<256x128xf32>
    %16 = arith.maximumf %14, %15 : vector<256x128xf32>
    %17 = arith.truncf %16 : vector<256x128xf32> to vector<256x128xbf16>
    %c0_12 = arith.constant 0 : index
    %c0_13 = arith.constant 0 : index
    %18 = vector.load %arg7[%c0_12, %c0_13] : memref<128x128xbf16, #tpu.memory_space<vmem>>, vector<128x128xbf16>
    %cst_14 = arith.constant dense<0.000000e+00> : vector<256x128xf32>
    %19 = tpu.matmul %17, %18, %cst_14 {dimension_numbers = #tpu.dot_dimension_numbers<[1], [0], [0], [1], [0, 0, 1, 1], [], []>} : vector<256x128xbf16>, vector<128x128xbf16>, vector<256x128xf32> -> vector<256x128xf32>
    %c0_15 = arith.constant 0 : index
    %c0_16 = arith.constant 0 : index
    %20 = vector.load %arg8[%c0_15, %c0_16] : memref<1x128xf32, #tpu.memory_space<vmem>>, vector<1x128xf32>
    %21 = vector.broadcast %20 : vector<1x128xf32> to vector<256x128xf32>
    %22 = arith.addf %19, %21 : vector<256x128xf32>
    %cst_17 = arith.constant 0.000000e+00 : f32
    %23 = vector.broadcast %cst_17 : f32 to vector<256x128xf32>
    %24 = arith.maximumf %22, %23 : vector<256x128xf32>
    %25 = arith.truncf %24 : vector<256x128xf32> to vector<256x128xbf16>
    %c0_18 = arith.constant 0 : index
    %c0_19 = arith.constant 0 : index
    %26 = vector.load %arg9[%c0_18, %c0_19] : memref<128x128xbf16, #tpu.memory_space<vmem>>, vector<128x128xbf16>
    %cst_20 = arith.constant dense<0.000000e+00> : vector<256x128xf32>
    %27 = tpu.matmul %25, %26, %cst_20 {dimension_numbers = #tpu.dot_dimension_numbers<[1], [0], [0], [1], [0, 0, 1, 1], [], []>} : vector<256x128xbf16>, vector<128x128xbf16>, vector<256x128xf32> -> vector<256x128xf32>
    %c0_21 = arith.constant 0 : index
    %c0_22 = arith.constant 0 : index
    %28 = vector.load %arg10[%c0_21, %c0_22] : memref<1x128xf32, #tpu.memory_space<vmem>>, vector<1x128xf32>
    %29 = vector.broadcast %28 : vector<1x128xf32> to vector<256x128xf32>
    %30 = arith.addf %27, %29 : vector<256x128xf32>
    %cst_23 = arith.constant 0.000000e+00 : f32
    %31 = vector.broadcast %cst_23 : f32 to vector<256x128xf32>
    %32 = arith.maximumf %30, %31 : vector<256x128xf32>
    %33 = arith.truncf %32 : vector<256x128xf32> to vector<256x128xbf16>
    %c0_24 = arith.constant 0 : index
    %c0_25 = arith.constant 0 : index
    %34 = vector.load %arg11[%c0_24, %c0_25] : memref<8x128xbf16, #tpu.memory_space<vmem>>, vector<8x128xbf16>
    %cst_26 = arith.constant dense<0.000000e+00> : vector<8x256xf32>
    %35 = tpu.matmul %34, %33, %cst_26 {dimension_numbers = #tpu.dot_dimension_numbers<[1], [1], [0], [0], [0, 0, 1, 0], [], []>} : vector<8x128xbf16>, vector<256x128xbf16>, vector<8x256xf32> -> vector<8x256xf32>
    %36 = vector.extract_strided_slice %35 {offsets = [0, 0], sizes = [1, 256], strides = [1, 1]} : vector<8x256xf32> to vector<1x256xf32>
    %c0_27 = arith.constant 0 : index
    %c0_28 = arith.constant 0 : index
    %37 = memref.load %arg12[%c0_27, %c0_28] : memref<1x1xf32, #tpu.memory_space<smem>>
    %38 = vector.broadcast %37 : f32 to vector<1x256xf32>
    %39 = arith.addf %36, %38 : vector<1x256xf32>
    %40 = arith.negf %39 : vector<1x256xf32>
    %41 = math.exp %40 : vector<1x256xf32>
    %cst_29 = arith.constant 1.000000e+00 : f32
    %42 = vector.broadcast %cst_29 : f32 to vector<1x256xf32>
    %43 = arith.addf %42, %41 : vector<1x256xf32>
    %44 = arith.divf %42, %43 : vector<1x256xf32>
    %c0_30 = arith.constant 0 : index
    %c0_31 = arith.constant 0 : index
    %c0_32 = arith.constant 0 : index
    %45 = vector.load %arg2[%c0_30, %c0_31, %c0_32] : memref<1x1x256xf32, #tpu.memory_space<vmem>>, vector<1x1x256xf32>
    %46 = vector.shape_cast %45 : vector<1x1x256xf32> to vector<1x256xf32>
    %47 = math.log %44 : vector<1x256xf32>
    %cst_33 = arith.constant -1.000000e+02 : f32
    %48 = vector.broadcast %cst_33 : f32 to vector<1x256xf32>
    %49 = arith.maximumf %47, %48 : vector<1x256xf32>
    %cst_34 = arith.constant 1.000000e+00 : f32
    %50 = vector.broadcast %cst_34 : f32 to vector<1x256xf32>
    %51 = arith.subf %50, %44 : vector<1x256xf32>
    %52 = math.log %51 : vector<1x256xf32>
    %cst_35 = arith.constant -1.000000e+02 : f32
    %53 = vector.broadcast %cst_35 : f32 to vector<1x256xf32>
    %54 = arith.maximumf %52, %53 : vector<1x256xf32>
    %55 = arith.mulf %46, %49 : vector<1x256xf32>
    %cst_36 = arith.constant 1.000000e+00 : f32
    %56 = vector.broadcast %cst_36 : f32 to vector<1x256xf32>
    %57 = arith.subf %56, %46 : vector<1x256xf32>
    %58 = arith.mulf %57, %54 : vector<1x256xf32>
    %59 = arith.addf %55, %58 : vector<1x256xf32>
    %cst_37 = arith.constant 0.000000e+00 : f32
    %60 = vector.broadcast %cst_37 : f32 to vector<1x256xf32>
    %61 = arith.subf %60, %59 : vector<1x256xf32>
    %c0_38 = arith.constant 0 : index
    %c0_39 = arith.constant 0 : index
    %c0_40 = arith.constant 0 : index
    %62 = vector.load %arg13[%c0_38, %c0_39, %c0_40] : memref<1x2x256xf32, #tpu.memory_space<vmem>>, vector<1x1x256xf32>
    %63 = vector.shape_cast %62 : vector<1x1x256xf32> to vector<1x256xf32>
    %64 = vector.shape_cast %44 : vector<1x256xf32> to vector<1x1x256xf32>
    tpu.vector_store %arg13[%c0_38, %c0_39, %c0_40], %64 {strides = array<i32>} : memref<1x2x256xf32, #tpu.memory_space<vmem>>, vector<1x1x256xf32>,
    %c0_41 = arith.constant 0 : index
    %c1 = arith.constant 1 : index
    %c0_42 = arith.constant 0 : index
    %65 = vector.load %arg13[%c0_41, %c1, %c0_42] : memref<1x2x256xf32, #tpu.memory_space<vmem>>, vector<1x1x256xf32>
    %66 = vector.shape_cast %65 : vector<1x1x256xf32> to vector<1x256xf32>
    %67 = vector.shape_cast %61 : vector<1x256xf32> to vector<1x1x256xf32>
    tpu.vector_store %arg13[%c0_41, %c1, %c0_42], %67 {strides = array<i32>} : memref<1x2x256xf32, #tpu.memory_space<vmem>>, vector<1x1x256xf32>,
    return
  }
  func.func @transform_0(%arg0: i32) -> (i32, i32) {
    %c0_i32 = arith.constant 0 : i32
    %c0_i32_0 = arith.constant 0 : i32
    return %arg0, %c0_i32 : i32, i32
  }
  func.func @transform_1(%arg0: i32) -> (i32, i32, i32) {
    %c0_i32 = arith.constant 0 : i32
    %c0_i32_0 = arith.constant 0 : i32
    %c0_i32_1 = arith.constant 0 : i32
    return %arg0, %c0_i32, %c0_i32_0 : i32, i32, i32
  }
  func.func @transform_2(%arg0: i32) -> (i32, i32) {
    %c0_i32 = arith.constant 0 : i32
    %c0_i32_0 = arith.constant 0 : i32
    %c0_i32_1 = arith.constant 0 : i32
    return %c0_i32, %c0_i32_0 : i32, i32
  }
  func.func @transform_3(%arg0: i32) -> (i32, i32) {
    %c0_i32 = arith.constant 0 : i32
    %c0_i32_0 = arith.constant 0 : i32
    %c0_i32_1 = arith.constant 0 : i32
    return %c0_i32, %c0_i32_0 : i32, i32
  }
  func.func @transform_4(%arg0: i32) -> (i32, i32) {
    %c0_i32 = arith.constant 0 : i32
    %c0_i32_0 = arith.constant 0 : i32
    %c0_i32_1 = arith.constant 0 : i32
    return %c0_i32, %c0_i32_0 : i32, i32
  }
  func.func @transform_5(%arg0: i32) -> (i32, i32) {
    %c0_i32 = arith.constant 0 : i32
    %c0_i32_0 = arith.constant 0 : i32
    %c0_i32_1 = arith.constant 0 : i32
    return %c0_i32, %c0_i32_0 : i32, i32
  }
  func.func @transform_6(%arg0: i32) -> (i32, i32) {
    %c0_i32 = arith.constant 0 : i32
    %c0_i32_0 = arith.constant 0 : i32
    %c0_i32_1 = arith.constant 0 : i32
    return %c0_i32, %c0_i32_0 : i32, i32
  }
  func.func @transform_7(%arg0: i32) -> (i32, i32) {
    %c0_i32 = arith.constant 0 : i32
    %c0_i32_0 = arith.constant 0 : i32
    %c0_i32_1 = arith.constant 0 : i32
    return %c0_i32, %c0_i32_0 : i32, i32
  }
  func.func @transform_8(%arg0: i32) -> (i32, i32) {
    %c0_i32 = arith.constant 0 : i32
    %c0_i32_0 = arith.constant 0 : i32
    %c0_i32_1 = arith.constant 0 : i32
    return %c0_i32, %c0_i32_0 : i32, i32
  }
  func.func @transform_9(%arg0: i32) -> (i32, i32) {
    %c0_i32 = arith.constant 0 : i32
    %c0_i32_0 = arith.constant 0 : i32
    %c0_i32_1 = arith.constant 0 : i32
    return %c0_i32, %c0_i32_0 : i32, i32
  }
  func.func @transform_10(%arg0: i32) -> (i32, i32) {
    %c0_i32 = arith.constant 0 : i32
    %c0_i32_0 = arith.constant 0 : i32
    %c0_i32_1 = arith.constant 0 : i32
    return %c0_i32, %c0_i32_0 : i32, i32
  }
  func.func @transform_11(%arg0: i32) -> (i32, i32) {
    %c0_i32 = arith.constant 0 : i32
    %c0_i32_0 = arith.constant 0 : i32
    %c0_i32_1 = arith.constant 0 : i32
    return %c0_i32, %c0_i32_0 : i32, i32
  }
  func.func @transform_12(%arg0: i32) -> (i32, i32, i32) {
    %c0_i32 = arith.constant 0 : i32
    %c0_i32_0 = arith.constant 0 : i32
    %c0_i32_1 = arith.constant 0 : i32
    return %arg0, %c0_i32, %c0_i32_0 : i32, i32, i32
  }
}

</mosaic_0001>

<bundles_post_ra>
// kernel: tpu_custom_call.1
= control target key start
LH: loop header
LB: loop body
LE: loop exit
PB: predicated region body
PF: predicated region fallthrough
CT: control target
= control target key end

     0   :  { %s4980_s0 = inlined_call_operand.vmem [shape: bf16[512,80], index: 0, kind: input, shape index: {}]   ;;  %s4981_s1 = inlined_call_operand.vmem [shape: f32[2,1,256], index: 1, kind: input, shape index: {}]   ;;  %s4982_s2 = inlined_call_operand.vmem [shape: bf16[80,768], index: 2, kind: input, shape index: {}]   ;;  %s4983_s3 = inlined_call_operand.hbm [shape: bf16[384,128], index: 3, kind: input, shape index: {}]   ;;  %s4984_s4 = inlined_call_operand.vmem [shape: bf16[80,128], index: 4, kind: input, shape index: {}]   ;;  %s4985_s5 = inlined_call_operand.vmem [shape: f32[1,128], index: 5, kind: input, shape index: {}]   ;;  %s4986_s6 = inlined_call_operand.vmem [shape: bf16[128,128], index: 6, kind: input, shape index: {}]   ;;  %s4987_s7 = inlined_call_operand.vmem [shape: f32[1,128], index: 7, kind: input, shape index: {}]   ;;  %s4988_s8 = inlined_call_operand.vmem [shape: bf16[128,128], index: 8, kind: input, shape index: {}]   ;;  %s4989_s9 = inlined_call_operand.vmem [shape: f32[1,128], index: 9, kind: input, shape index: {}]   ;;  %s4990_s10 = inlined_call_operand.vmem [shape: bf16[8,128], index: 10, kind: input, shape index: {}]   ;;  %s4991_s11 = inlined_call_operand.<no memory space> [shape: f32[1,1], index: 11, kind: input, shape index: {}]   ;;  %s4992_s12 = inlined_call_operand.hbm [shape: f32[2,2,256], index: 12, kind: output, shape index: {}]  }
   0x1   :  { %4998 = sst [smem:[#allocation43_spill]] %s4983_s3 }
   0x2   :  { %17 = sst [smem:[#allocation2]] %s4991_s11 }
   0x3   :  { %18 = vsyncpa [#allocation4], 0 }
   0x4   :  { %19 = vsyncpa [#allocation5], 0 }
   0x5   :  { %21 = vsyncpa [#allocation5 + $0x1], 0  ;;  %s3603_s23 = smov 0   ;;  %s3605_s24 = smov 0  }
   0x6   :  { %s3607_s25 = smov 0   ;;  %s3609_s26 = smov 0  }
   0x7 LB: > { %s3624_s11 = sadd.s32 4294967295, %s3530_s26   ;;  %s2763_s27 = sadd.s32 4294967294, %s3530_s26   ;;  %s3530_s26 = sphi %s3609_s26, %s5091_s26   ;;  %s3526_s25 = sphi %s3607_s25, %s5090_s25   ;;  %s3522_s24 = sphi %s3605_s24, %s5089_s24   ;;  %s3518_s23 = sphi %s3603_s23, %s5088_s23  }
   0x8   : > { %s3628_s28 = sadd.s32 1, %s3530_s26   ;;  %s296_s29 = sadd.s32 1, %s3526_s25 }
   0x9   : > { %s293_s30 = ssub.s32 %s3530_s26, %s3628_s28  ;;  %p306_p0 = scmp.ne.s32.totalorder %s3526_s25, %s3522_s24 }
   0xa   : > { %p294_p1 = scmp.eq.s32.totalorder %s293_s30, 0  ;;  %p307_p2 = scmp.eq.s32.totalorder %s3624_s11, 1 }
   0xb   : > { %p312_p3 = scmp.ne.s32.totalorder %s3522_s24, %s3518_s23  ;;  %p313_p4 = scmp.eq.s32.totalorder %s2763_s27, 1 }
   0xc   : > { %s3639_s13 = scalar_select %p294_p1, %s3526_s25, %s296_s29  }
   0xd   : > { %p3641_p5 = por %p307_p2, %p306_p0  ;;  %p3645_p6 = por %p313_p4, %p312_p3 }
   0xe   : > { %4999 = sst [smem:[#allocation9_spill]] %s3639_s13  ;;  %p2764_p7 = scmp.ge.s32.totalorder %s3530_s26, 1 }
   0xf   : > { %p320_p8 = scmp.lt.s32.totalorder %s3530_s26, 3  ;;  %p3363_p9 = scmp.eq.s32.totalorder %s3624_s11, 0 }
  0x10   : > { %s5002_s3 = sld [smem:[#allocation43_spill]]  ;;  %s3532_s19 = smov [#allocation3]  }
  0x11   : > { %p321_p10 = pnand %p2764_p7, %p320_p8  ;;  %s336_s20 = sshll.u32 %s3532_s19, 4  ;;  %s337_s20 = int_to_ptr.vmem [resolvable:$true] %s336_s20 }
  0x12   : > { %s3533_s21 = smov 64   ;;  %s3534_s22 = smov 4  }
  0x13   : > { %p3355_p11 = pneg %p321_p10  ;;  %392 = sbr.rel (%p321_p10) target bundleno = 1480 (0x5c8), region = 68 }
  0x15   : > { %p3356_p12 = pnand %p3363_p9, %p3355_p11 }
  0x16   : > { %s334_s18 = sshll.u32 %s5002_s3, 4  ;;  %s335_s18 = int_to_ptr.hbm [resolvable:$true] %s334_s18 }
  0x17   : > { %3358 = dma.hbm_to_vmem [thread:$0]  (!%p3356_p12), %s335_s18, 3072, %s337_s20, [#allocation4], %s3533_s21, %s3533_s21, %s3534_s22  }
  0x18   : > { %3509 = dma.done.wait (%p3363_p9), [#allocation4], 3072  }
  0x19   : > { %3511 = vsyncadd (%p3363_p9), [#allocation4], 4294964224  ;;  %s2770_s27 = sshll.u32 %s3624_s11, 5  ;;  %v2935_v0 = vld [vmem:[%s4982_s2 + $0xc0] sm:$0xf]  ;;  %vm742_vm0 = vcmask 654336  }
  0x1a   : > { %p440_p13 = scmp.lt.s32.totalorder %s2770_s27, 63  ;;  %v3300_v1 = vld [vmem:[%s4982_s2 + $0xd4] sm:$0xf0]  ;;  %v3297_v2 = vld [vmem:[%s4982_s2 + $0xc4] sm:$0xf]  ;;  %s2578_s3 = sld [smem:[#allocation2]] }
  0x1b   : > { %v2936_v3 = vor.u32 %v3300_v1, %v2935_v0  ;;  %v2937_v4 = vld [vmem:[%s4982_s2 + $0xd8] sm:$0xf0]  ;;  %v2943_v5 = vld [vmem:[%s4982_s2 + $0xc8] sm:$0xf]  ;;  %v3301_v6 = vld [vmem:[%s4982_s2 + $0xdc] sm:$0xf0] }
  0x1c   : > { %s5093_s27 = smov (!%p440_p13, %s2770_s27), 63  ;;  %v2940_v7 = vor.u32 %v3297_v2, %v2937_v4  ;;  %v2944_v8 = vor.u32 %v3301_v6, %v2943_v5  ;;  %v3298_v9 = vld [vmem:[%s4982_s2 + $0xcc] sm:$0xf]  ;;  %v2945_v10 = vld [vmem:[%s4982_s2 + $0xe0] sm:$0xf0]  ;;  %p445_p0 = scmp.lt.s32.totalorder %s3624_s11, 1 }
  0x1d   : > { %v2911_v11 = vld [vmem:[%s4982_s2 + $0x90] sm:$0xf]  ;;  %794 = vmatpush.bf16.msra.mxu0 %v2936_v3  ;;  %v2948_v12 = vor.u32 %v3298_v9, %v2945_v10  ;;  %v3294_v13 = vld [vmem:[%s4982_s2 + $0xa4] sm:$0xf0]  ;;  %v3291_v14 = vld [vmem:[%s4982_s2 + $0x94] sm:$0xf] }
  0x1e   : > { %v2913_v15 = vld [vmem:[%s4982_s2 + $0xa8] sm:$0xf0]  ;;  %883 = vmatpush.bf16.msra.mxu1 %v2940_v7  ;;  %972 = vmatpush.bf16.msra.mxu2 %v2944_v8  ;;  %v2912_v16 = vor.u32 %v3294_v13, %v2911_v11  ;;  %v2919_v18 = vld [vmem:[%s4982_s2 + $0x98] sm:$0xf]  ;;  %v3295_v19 = vld [vmem:[%s4982_s2 + $0xac] sm:$0xf0] }
  0x1f   : > { %v2916_v17 = vor.u32 %v3291_v14, %v2913_v15  ;;  %v3292_v20 = vld [vmem:[%s4982_s2 + $0x9c] sm:$0xf]  ;;  %1061 = vmatpush.bf16.msra.mxu3 %v2948_v12  ;;  %v2920_v21 = vor.u32 %v3295_v19, %v2919_v18  ;;  %v2921_v22 = vld [vmem:[%s4982_s2 + $0xb0] sm:$0xf0]  ;;  %v2887_v23 = vld [vmem:[%s4982_s2 + $0x60] sm:$0xf] }
  0x20   : > { %v3288_v24 = vld [vmem:[%s4982_s2 + $0x74] sm:$0xf0]  ;;  %v2924_v25 = vor.u32 %v3292_v20, %v2921_v22  ;;  %v3285_v26 = vld [vmem:[%s4982_s2 + $0x64] sm:$0xf]  ;;  %v2889_v27 = vld [vmem:[%s4982_s2 + $0x78] sm:$0xf0] }
  0x21   : > { %v2895_v28 = vld [vmem:[%s4982_s2 + $0x68] sm:$0xf]  ;;  %795 = vmatpush.bf16.msra.mxu0 %v2912_v16  ;;  %v2888_v29 = vor.u32 %v3288_v24, %v2887_v23  ;;  %v3289_v30 = vld [vmem:[%s4982_s2 + $0x7c] sm:$0xf0]  ;;  %v3286_v31 = vld [vmem:[%s4982_s2 + $0x6c] sm:$0xf]  ;;  %v2892_v33 = vor.u32 %v3285_v26, %v2889_v27 }
  0x22   : > { %v2897_v32 = vld [vmem:[%s4982_s2 + $0x80] sm:$0xf0]  ;;  %884 = vmatpush.bf16.msra.mxu1 %v2916_v17  ;;  %973 = vmatpush.bf16.msra.mxu2 %v2920_v21  ;;  %v2896_v34 = vor.u32 %v3289_v30, %v2895_v28  ;;  %v2863_v35 = vld [vmem:[%s4982_s2 + $0x30] sm:$0xf]  ;;  %v3282_v36 = vld [vmem:[%s4982_s2 + $0x44] sm:$0xf0] }
  0x23   : > { %v3279_v37 = vld [vmem:[%s4982_s2 + $0x34] sm:$0xf]  ;;  %1062 = vmatpush.bf16.msra.mxu3 %v2924_v25  ;;  %v2900_v38 = vor.u32 %v3286_v31, %v2897_v32  ;;  %v2865_v39 = vld [vmem:[%s4982_s2 + $0x48] sm:$0xf0]  ;;  %v2871_v40 = vld [vmem:[%s4982_s2 + $0x38] sm:$0xf]  ;;  %v2864_v44 = vor.u32 %v3282_v36, %v2863_v35 }
  0x24   : > { %v3283_v41 = vld [vmem:[%s4982_s2 + $0x4c] sm:$0xf0]  ;;  %v3280_v42 = vld [vmem:[%s4982_s2 + $0x3c] sm:$0xf]  ;;  %v2873_v43 = vld [vmem:[%s4982_s2 + $0x50] sm:$0xf0]  ;;  %v2868_v46 = vor.u32 %v3279_v37, %v2865_v39 }
  0x25   : > { %796 = vmatpush.bf16.msra.mxu0 %v2888_v29  ;;  %v2839_v45 = vld [vmem:[%s4982_s2] sm:$0xf]  ;;  %s2771_s29 = sshll.u32 %s5093_s27, 2  ;;  %v2872_v47 = vor.u32 %v3283_v41, %v2871_v40  ;;  %v3276_v48 = vld [vmem:[%s4982_s2 + $0x14] sm:$0xf0]  ;;  %v2876_v51 = vor.u32 %v3280_v42, %v2873_v43  ;;  %s436_s27 = sand.u32 1, %s3522_s24  }
  0x26   : > { %885 = vmatpush.bf16.msra.mxu1 %v2892_v33  ;;  %974 = vmatpush.bf16.msra.mxu2 %v2896_v34  ;;  %v3273_v49 = vld [vmem:[%s4982_s2 + $0x4] sm:$0xf]  ;;  %v2841_v50 = vld [vmem:[%s4982_s2 + $0x18] sm:$0xf0]  ;;  %v2847_v52 = vld [vmem:[%s4982_s2 + $0x8] sm:$0xf]  ;;  %v2840_v56 = vor.u32 %v3276_v48, %v2839_v45  ;;  %s3788_s20 = scalar_lea.vmem %s4980_s0, %s2771_s29 }
  0x27   : > { %1063 = vmatpush.bf16.msra.mxu3 %v2900_v38  ;;  %v3277_v53 = vld [vmem:[%s4982_s2 + $0x1c] sm:$0xf0]  ;;  %v3274_v54 = vld [vmem:[%s4982_s2 + $0xc] sm:$0xf]  ;;  %v2849_v55 = vld [vmem:[%s4982_s2 + $0x20] sm:$0xf0]  ;;  %v2844_v57 = vor.u32 %v3273_v49, %v2841_v50 }
  0x28   : > { %v2848_v58 = vor.u32 %v3277_v53, %v2847_v52  ;;  %v2852_v59 = vor.u32 %v3274_v54, %v2849_v55  ;;  %v3791_v60 = vld [vmem:[%s3788_s20] sm:$0xff]  ;;  %v3802_v61 = vld [vmem:[%s3788_s20 + $0x8] sm:$0xff]  ;;  %v3813_v62 = vld [vmem:[%s3788_s20 + $0x10] sm:$0xff]  ;;  %s446_s21 = scalar_select %p445_p0, %s3624_s11, 1  ;;  %vm2638_vm9 = vcmask 1040384  }
  0x29   : > { %797 = vmatpush.bf16.msra.mxu0 %v2864_v44  ;;  %5003 = vst [vmem:[#allocation10_spill] sm:$0xff] %v3791_v60  ;;  %v3824_v63 = vld [vmem:[%s3788_s20 + $0x18] sm:$0xff]  ;;  %v3835_v0 = vld [vmem:[%s3788_s20 + $0x20] sm:$0xff]  ;;  %v3846_v1 = vld [vmem:[%s3788_s20 + $0x28] sm:$0xff]  ;;  %s3348_s18 = sshll.u32 %s3624_s11, 2  ;;  %s2664_s11 = scalar_lea.sflag [#allocation5], %s436_s27 }
  0x2a   : > { %886 = vmatpush.bf16.msra.mxu1 %v2868_v46  ;;  %975 = vmatpush.bf16.msra.mxu2 %v2872_v47  ;;  %v3857_v2 = vld [vmem:[%s3788_s20 + $0x30] sm:$0xff]  ;;  %v3868_v3 = vld [vmem:[%s3788_s20 + $0x38] sm:$0xff]  ;;  %v3879_v4 = vld [vmem:[%s3788_s20 + $0x40] sm:$0xff]  ;;  %s2772_s13 = sshll.u32 %s446_s21, 1 }
  0x2b   : > { %1064 = vmatpush.bf16.msra.mxu3 %v2876_v51  ;;  %v3900_v13 = vld [vmem:[%s3788_s20 + $0x48] sm:$0xff]  ;;  %v3925_v25 = vld [vmem:[%s3788_s20 + $0x50] sm:$0xff]  ;;  %v3962_v43 = vld [vmem:[%s3788_s20 + $0x58] sm:$0xff]  ;;  %s448_s17 = scalar_lea.vmem %s4981_s1, %s2772_s13 }
  0x2c   : > { %v2951_v31 = vld [vmem:[%s4982_s2 + $0xd0] sm:$0xf]  ;;  %v3302_v32 = vld [vmem:[%s4982_s2 + $0xe4] sm:$0xf0]  ;;  %v3299_v39 = vld [vmem:[%s4982_s2 + $0xd4] sm:$0xf] }
  0x2d   : > { %798 = vmatpush.bf16.msra.mxu0 %v2840_v56  ;;  %v2952_v33 = vor.u32 %v3302_v32, %v2951_v31  ;;  %v2953_v40 = vld [vmem:[%s4982_s2 + $0xe8] sm:$0xf0]  ;;  %v3987_v55 = vld [vmem:[%s3788_s20 + $0x60] sm:$0xff] }
  0x2e   : > { %887 = vmatpush.bf16.msra.mxu1 %v2844_v57  ;;  %976 = vmatpush.bf16.msra.mxu2 %v2848_v58  ;;  %v2956_v41 = vor.u32 %v3299_v39, %v2953_v40  ;;  %v4010_v31 = vld [vmem:[%s3788_s20 + $0x68] sm:$0xff] }
  0x2f   : > { %1065 = vmatpush.bf16.msra.mxu3 %v2852_v59 }
  0x30   : > { %2957 = vmatmul.msk.bf16.vlgmr.msra.gmra.mxu0 %vm742_vm0, %v3791_v60 }
  0x31   : > { %2973 = vmatmul.msk.bf16.vlgmr.msra.gmra.mxu1 %vm742_vm0, %v3791_v60  ;;  %2989 = vmatmul.msk.bf16.vlgmr.msra.gmra.mxu2 %vm742_vm0, %v3791_v60 }
  0x32   : > { %3005 = vmatmul.msk.bf16.vlgmr.msra.gmra.mxu3 %vm742_vm0, %v3791_v60  ;;  %1150 = vmatpush.bf16.msrb.mxu0 %v2952_v33 }
  0x33   : > { %1239 = vmatpush.bf16.msrb.mxu1 %v2956_v41  ;;  %v2881_v41 = vld [vmem:[%s4982_s2 + $0x58] sm:$0xf0] }
  0x40   : > { %2958 = vmatmul.msk.bf16.gmra.mxu0 %vm742_vm0, %v3802_v61 }
  0x41   : > { %2974 = vmatmul.msk.bf16.gmra.mxu1 %vm742_vm0, %v3802_v61  ;;  %2990 = vmatmul.msk.bf16.gmra.mxu2 %vm742_vm0, %v3802_v61 }
  0x42   : > { %3006 = vmatmul.msk.bf16.gmra.mxu3 %vm742_vm0, %v3802_v61 }
  0x50   : > { %2959 = vmatmul.msk.bf16.gmra.mxu0 %vm742_vm0, %v3813_v62 }
  0x51   : > { %2975 = vmatmul.msk.bf16.gmra.mxu1 %vm742_vm0, %v3813_v62  ;;  %2991 = vmatmul.msk.bf16.gmra.mxu2 %vm742_vm0, %v3813_v62 }
  0x52   : > { %3007 = vmatmul.msk.bf16.gmra.mxu3 %vm742_vm0, %v3813_v62 }
  0x60   : > { %2960 = vmatmul.msk.bf16.gmra.mxu0 %vm742_vm0, %v3824_v63 }
  0x61   : > { %2976 = vmatmul.msk.bf16.gmra.mxu1 %vm742_vm0, %v3824_v63  ;;  %2992 = vmatmul.msk.bf16.gmra.mxu2 %vm742_vm0, %v3824_v63 }
  0x62   : > { %3008 = vmatmul.msk.bf16.gmra.mxu3 %vm742_vm0, %v3824_v63 }
  0x70   : > { %2961 = vmatmul.msk.bf16.gmra.mxu0 %vm742_vm0, %v3835_v0 }
  0x71   : > { %2977 = vmatmul.msk.bf16.gmra.mxu1 %vm742_vm0, %v3835_v0  ;;  %2993 = vmatmul.msk.bf16.gmra.mxu2 %vm742_vm0, %v3835_v0 }
  0x72   : > { %3009 = vmatmul.msk.bf16.gmra.mxu3 %vm742_vm0, %v3835_v0 }
  0x80   : > { %2962 = vmatmul.msk.bf16.gmra.mxu0 %vm742_vm0, %v3846_v1 }
  0x81   : > { %2978 = vmatmul.msk.bf16.gmra.mxu1 %vm742_vm0, %v3846_v1  ;;  %2994 = vmatmul.msk.bf16.gmra.mxu2 %vm742_vm0, %v3846_v1 }
  0x82   : > { %3010 = vmatmul.msk.bf16.gmra.mxu3 %vm742_vm0, %v3846_v1 }
  0x90   : > { %2963 = vmatmul.msk.bf16.gmra.mxu0 %vm742_vm0, %v3857_v2 }
  0x91   : > { %2979 = vmatmul.msk.bf16.gmra.mxu1 %vm742_vm0, %v3857_v2  ;;  %2995 = vmatmul.msk.bf16.gmra.mxu2 %vm742_vm0, %v3857_v2 }
  0x92   : > { %3011 = vmatmul.msk.bf16.gmra.mxu3 %vm742_vm0, %v3857_v2 }
  0xa0   : > { %2964 = vmatmul.msk.bf16.gmra.mxu0 %vm742_vm0, %v3868_v3 }
  0xa1   : > { %2980 = vmatmul.msk.bf16.gmra.mxu1 %vm742_vm0, %v3868_v3  ;;  %2996 = vmatmul.msk.bf16.gmra.mxu2 %vm742_vm0, %v3868_v3 }
  0xa2   : > { %3012 = vmatmul.msk.bf16.gmra.mxu3 %vm742_vm0, %v3868_v3 }
  0xad   : > { %v800_v5 = vpop.f32.mrf.mxu0 }
  0xae   : > { %v3881_v6 = vpop.f32.mrf.mxu1 }
  0xb0   : > { %2965 = vmatmul.msk.bf16.gmra.mxu0 %vm742_vm0, %v3879_v4 }
  0xb1   : > { %2981 = vmatmul.msk.bf16.gmra.mxu1 %vm742_vm0, %v3879_v4  ;;  %2997 = vmatmul.msk.bf16.gmra.mxu2 %vm742_vm0, %v3879_v4 }
  0xb2   : > { %3013 = vmatmul.msk.bf16.gmra.mxu3 %vm742_vm0, %v3879_v4 }
  0xb4   : > { %v3891_v7 = vpop.f32.mrf.mxu2 }
  0xb5   : > { %v1067_v8 = vpop.f32.mrf.mxu3  ;;  %v802_v9 = vpop.f32.mrf.mxu0 }
  0xb6   : > { %v3893_v10 = vmul.f32 %v1067_v8, %v800_v5  ;;  %v3895_v11 = vpop.f32.mrf.mxu1  ;;  %v3315_v8 = vld [vmem:[#allocation3 + $0x38] sm:$0xff]  ;;  %v4069_v5 = vld [vmem:[%s3788_s20 + $0x70] sm:$0xff] }
  0xb7   : > { %1671 = vmatpush.bf16.msrb.mxu2 %v3315_v8  ;;  %5004 = vst [vmem:[#allocation11_spill] sm:$0xff] %v4069_v5 }
  0xbc   : > { %v3897_v12 = vpop.f32.mrf.mxu2 }
  0xbd   : > { %v1069_v14 = vpop.f32.mrf.mxu3  ;;  %v805_v15 = vpop.f32.mrf.mxu0 }
  0xbe   : > { %v3902_v16 = vmul.f32 %v1069_v14, %v802_v9  ;;  %v3904_v17 = vpop.f32.mrf.mxu1 }
  0xc0   : > { %2966 = vmatmul.msk.bf16.gmra.mxu0 %vm742_vm0, %v3900_v13 }
  0xc1   : > { %2982 = vmatmul.msk.bf16.gmra.mxu1 %vm742_vm0, %v3900_v13  ;;  %2998 = vmatmul.msk.bf16.gmra.mxu2 %vm742_vm0, %v3900_v13 }
  0xc2   : > { %3014 = vmatmul.msk.bf16.gmra.mxu3 %vm742_vm0, %v3900_v13 }
  0xc4   : > { %v3916_v19 = vpop.f32.mrf.mxu2 }
  0xc5   : > { %v1072_v20 = vpop.f32.mrf.mxu3  ;;  %v807_v21 = vpop.f32.mrf.mxu0 }
  0xc6   : > { %v3918_v22 = vmul.f32 %v1072_v20, %v805_v15  ;;  %v3920_v23 = vpop.f32.mrf.mxu1  ;;  %v3314_v20 = vld [vmem:[#allocation3 + $0x30] sm:$0xff] }
  0xc7   : > { %1672 = vmatpush.bf16.msrb.mxu2 %v3314_v20  ;;  %v3290_v20 = vld [vmem:[%s4982_s2 + $0x84] sm:$0xf0] }
  0xcc   : > { %v3922_v24 = vpop.f32.mrf.mxu2 }
  0xcd   : > { %v1074_v26 = vpop.f32.mrf.mxu3  ;;  %v810_v27 = vpop.f32.mrf.mxu0 }
  0xce   : > { %v3927_v28 = vmul.f32 %v1074_v26, %v807_v21  ;;  %v3929_v29 = vpop.f32.mrf.mxu1  ;;  %v3313_v26 = vld [vmem:[#allocation3 + $0x28] sm:$0xff] }
  0xcf   : > { %1673 = vmatpush.bf16.msrb.mxu2 %v3313_v26  ;;  %v3287_v26 = vld [vmem:[%s4982_s2 + $0x74] sm:$0xf] }
  0xd0   : > { %2967 = vmatmul.msk.bf16.gmra.mxu0 %vm742_vm0, %v3925_v25 }
  0xd1   : > { %2983 = vmatmul.msk.bf16.gmra.mxu1 %vm742_vm0, %v3925_v25  ;;  %2999 = vmatmul.msk.bf16.gmra.mxu2 %vm742_vm0, %v3925_v25 }
  0xd2   : > { %3015 = vmatmul.msk.bf16.gmra.mxu3 %vm742_vm0, %v3925_v25 }
  0xd4   : > { %v3947_v34 = vpop.f32.mrf.mxu2 }
  0xd5   : > { %v1077_v35 = vpop.f32.mrf.mxu3  ;;  %v812_v36 = vpop.f32.mrf.mxu0 }
  0xd6   : > { %v3949_v37 = vmul.f32 %v1077_v35, %v810_v27  ;;  %v3951_v38 = vpop.f32.mrf.mxu1  ;;  %v3312_v35 = vld [vmem:[#allocation3 + $0x20] sm:$0xff] }
  0xd7   : > { %1674 = vmatpush.bf16.msrb.mxu2 %v3312_v35 }
  0xdc   : > { %v3959_v42 = vpop.f32.mrf.mxu2 }
  0xdd   : > { %v1079_v44 = vpop.f32.mrf.mxu3  ;;  %v815_v45 = vpop.f32.mrf.mxu0 }
  0xde   : > { %v3964_v46 = vmul.f32 %v1079_v44, %v812_v36  ;;  %v3966_v47 = vpop.f32.mrf.mxu1  ;;  %v2927_v44 = vld [vmem:[%s4982_s2 + $0xa0] sm:$0xf] }
  0xe0   : > { %2968 = vmatmul.msk.bf16.gmra.mxu0 %vm742_vm0, %v3962_v43 }
  0xe1   : > { %2984 = vmatmul.msk.bf16.gmra.mxu1 %vm742_vm0, %v3962_v43  ;;  %3000 = vmatmul.msk.bf16.gmra.mxu2 %vm742_vm0, %v3962_v43 }
  0xe2   : > { %3016 = vmatmul.msk.bf16.gmra.mxu3 %vm742_vm0, %v3962_v43 }
  0xe4   : > { %v3978_v49 = vpop.f32.mrf.mxu2 }
  0xe5   : > { %v1082_v50 = vpop.f32.mrf.mxu3  ;;  %v817_v51 = vpop.f32.mrf.mxu0 }
  0xe6   : > { %v3980_v52 = vmul.f32 %v1082_v50, %v815_v45  ;;  %v3982_v53 = vpop.f32.mrf.mxu1  ;;  %v3296_v45 = vld [vmem:[%s4982_s2 + $0xb4] sm:$0xf0] }
  0xe7   : > { %v2928_v50 = vor.u32 %v3296_v45, %v2927_v44  ;;  %v2905_v45 = vld [vmem:[%s4982_s2 + $0x88] sm:$0xf0] }
  0xe9   : > { %1151 = vmatpush.bf16.msrb.mxu0 %v2928_v50  ;;  %v3310_v50 = vld [vmem:[#allocation3 + $0x10] sm:$0xff] }
  0xec   : > { %v3984_v54 = vpop.f32.mrf.mxu2 }
  0xed   : > { %v1084_v56 = vpop.f32.mrf.mxu3  ;;  %v820_v57 = vpop.f32.mrf.mxu0 }
  0xee   : > { %v3989_v58 = vmul.f32 %v1084_v56, %v817_v51  ;;  %v3991_v59 = vpop.f32.mrf.mxu1  ;;  %v3293_v51 = vld [vmem:[%s4982_s2 + $0xa4] sm:$0xf]  ;;  %v2929_v56 = vld [vmem:[%s4982_s2 + $0xb8] sm:$0xf0] }
  0xef   : > { %v2932_v8 = vor.u32 %v3293_v51, %v2929_v56  ;;  %v2908_v56 = vor.u32 %v3287_v26, %v2905_v45  ;;  %v3309_v26 = vld [vmem:[#allocation3 + $0x8] sm:$0xff] }
  0xf0   : > { %2969 = vmatmul.msk.bf16.gmra.mxu0 %vm742_vm0, %v3987_v55 }
  0xf1   : > { %2985 = vmatmul.msk.bf16.gmra.mxu1 %vm742_vm0, %v3987_v55  ;;  %3001 = vmatmul.msk.bf16.gmra.mxu2 %vm742_vm0, %v3987_v55 }
  0xf2   : > { %3017 = vmatmul.msk.bf16.gmra.mxu3 %vm742_vm0, %v3987_v55  ;;  %1240 = vmatpush.bf16.msrb.mxu1 %v2932_v8  ;;  %v3284_v8 = vld [vmem:[%s4982_s2 + $0x54] sm:$0xf0] }
  0xf4   : > { %v4003_v9 = vpop.f32.mrf.mxu2 }
  0xf5   : > { %v1087_v14 = vpop.f32.mrf.mxu3  ;;  %v822_v15 = vpop.f32.mrf.mxu0 }
  0xf6   : > { %v4005_v21 = vpop.f32.mrf.mxu1  ;;  %v4012_v36 = vmul.f32 %v1087_v14, %v820_v57  ;;  %v3311_v57 = vld [vmem:[#allocation3 + $0x18] sm:$0xff]  ;;  %1241 = vmatpush.bf16.msrb.mxu1 %v2908_v56  ;;  %v3275_v56 = vld [vmem:[%s4982_s2 + $0x14] sm:$0xf] }
  0xf7   : > { %1675 = vmatpush.bf16.msrb.mxu2 %v3311_v57  ;;  %v2879_v57 = vld [vmem:[%s4982_s2 + $0x40] sm:$0xf] }
  0xfb   : > { %1676 = vmatpush.bf16.msrb.mxu2 %v3310_v50  ;;  %v3278_v50 = vld [vmem:[%s4982_s2 + $0x24] sm:$0xf0] }
  0xfc   : > { %v4007_v27 = vpop.f32.mrf.mxu2 }
  0xfd   : > { %v1089_v32 = vpop.f32.mrf.mxu3  ;;  %v825_v33 = vpop.f32.mrf.mxu0 }
  0xfe   : > { %v4014_v39 = vmul.f32 %v1089_v32, %v822_v15  ;;  %v4016_v40 = vpop.f32.mrf.mxu1  ;;  %v2903_v15 = vld [vmem:[%s4982_s2 + $0x70] sm:$0xf] }
  0xff   : > { %v2904_v44 = vor.u32 %v3290_v20, %v2903_v15  ;;  %v3281_v15 = vld [vmem:[%s4982_s2 + $0x44] sm:$0xf]  ;;  %v2880_v20 = vor.u32 %v3284_v8, %v2879_v57  ;;  %1677 = vmatpush.bf16.msrb.mxu2 %v3309_v26 }
 0x100   : > { %2970 = vmatmul.msk.bf16.gmra.mxu0 %vm742_vm0, %v4010_v31  ;;  %v2884_v45 = vor.u32 %v3281_v15, %v2881_v41  ;;  %v2857_v15 = vld [vmem:[%s4982_s2 + $0x28] sm:$0xf0] }
 0x101   : > { %2986 = vmatmul.msk.bf16.gmra.mxu1 %vm742_vm0, %v4010_v31  ;;  %3002 = vmatmul.msk.bf16.gmra.mxu2 %vm742_vm0, %v4010_v31  ;;  %v2860_v18 = vor.u32 %v3275_v56, %v2857_v15  ;;  %v4108_v56 = vld [vmem:[%s3788_s20 + $0x78] sm:$0xff] }
 0x102   : > { %3018 = vmatmul.msk.bf16.gmra.mxu3 %vm742_vm0, %v4010_v31  ;;  %1152 = vmatpush.bf16.msrb.mxu0 %v2904_v44  ;;  %v2855_v44 = vld [vmem:[%s4982_s2 + $0x10] sm:$0xf]  ;;  %5010 = vst [vmem:[#allocation17_spill] sm:$0xff] %v4108_v56 }
 0x103   : > { %1242 = vmatpush.bf16.msrb.mxu1 %v2884_v45  ;;  %v2856_v8 = vor.u32 %v3278_v50, %v2855_v44 }
 0x104   : > { %v4040_v14 = vpop.f32.mrf.mxu2 }
 0x105   : > { %v1092_v32 = vpop.f32.mrf.mxu3  ;;  %v827_v35 = vpop.f32.mrf.mxu0 }
 0x106   : > { %v4054_v51 = vpop.f32.mrf.mxu1  ;;  %1153 = vmatpush.bf16.msrb.mxu0 %v2880_v20  ;;  %v3308_v20 = vld [vmem:[#allocation3] sm:$0xff]  ;;  %v4085_v26 = vmul.f32 %v1092_v32, %v825_v33 }
 0x107   : > { %1678 = vmatpush.bf16.msrb.mxu2 %v3308_v20  ;;  %1243 = vmatpush.bf16.msrb.mxu1 %v2860_v18 }
 0x10a   : > { %1154 = vmatpush.bf16.msrb.mxu0 %v2856_v8 }
 0x10c   : > { %v4071_v48 = vpop.f32.mrf.mxu2 }
 0x10d   : > { %5005 = vst [vmem:[#allocation12_spill] sm:$0xff] %v4071_v48  ;;  %v1094_v41 = vpop.f32.mrf.mxu3  ;;  %v830_v57 = vpop.f32.mrf.mxu0 }
 0x10e   : > { %v4087_v45 = vmul.f32 %v1094_v41, %v827_v35  ;;  %v4089_v30 = vpop.f32.mrf.mxu1 }
 0x10f   : > { %5006 = vst [vmem:[#allocation13_spill] sm:$0xff] %v4089_v30 }
 0x110   : > { %2971 = vmatmul.msk.bf16.gmra.mxu0 %vm742_vm0, %v4069_v5 }
 0x111   : > { %2987 = vmatmul.msk.bf16.gmra.mxu1 %vm742_vm0, %v4069_v5  ;;  %3003 = vmatmul.msk.bf16.gmra.mxu2 %vm742_vm0, %v4069_v5 }
 0x112   : > { %3019 = vmatmul.msk.bf16.gmra.mxu3 %vm742_vm0, %v4069_v5 }
 0x114   : > { %v4101_v33 = vpop.f32.mrf.mxu2 }
 0x115   : > { %5007 = vst [vmem:[#allocation14_spill] sm:$0xff] %v4101_v33  ;;  %v1097_v32 = vpop.f32.mrf.mxu3  ;;  %v832_v35 = vpop.f32.mrf.mxu0 }
 0x116   : > { %v4103_v44 = vpop.f32.mrf.mxu1  ;;  %v4110_v8 = vmul.f32 %v1097_v32, %v830_v57 }
 0x117   : > { %5008 = vst [vmem:[#allocation15_spill] sm:$0xff] %v4103_v44 }
 0x11c   : > { %v4105_v50 = vpop.f32.mrf.mxu2 }
 0x11d   : > { %5009 = vst [vmem:[#allocation16_spill] sm:$0xff] %v4105_v50  ;;  %v1099_v18 = vpop.f32.mrf.mxu3  ;;  %v835_v41 = vpop.f32.mrf.mxu0 }
 0x11e   : > { %v4112_v15 = vmul.f32 %v1099_v18, %v832_v35  ;;  %v4114_v20 = vpop.f32.mrf.mxu1 }
 0x11f   : > { %5011 = vst [vmem:[#allocation18_spill] sm:$0xff] %v4114_v20 }
 0x120   : > { %2972 = vmatmul.msk.bf16.gmra.mxu0 %vm742_vm0, %v4108_v56 }
 0x121   : > { %2988 = vmatmul.msk.bf16.gmra.mxu1 %vm742_vm0, %v4108_v56  ;;  %3004 = vmatmul.msk.bf16.gmra.mxu2 %vm742_vm0, %v4108_v56 }
 0x122   : > { %3020 = vmatmul.msk.bf16.gmra.mxu3 %vm742_vm0, %v4108_v56 }
 0x124   : > { %v4126_v35 = vpop.f32.mrf.mxu2 }
 0x125   : > { %v1102_v57 = vpop.f32.mrf.mxu3  ;;  %v837_v32 = vpop.f32.mrf.mxu0  ;;  %5012 = vst [vmem:[#allocation19_spill] sm:$0xff] %v4126_v35  ;;  %v5016_v35 = vpack.c.bf16 %v3902_v16, %v3893_v10  ;;  %v5020_v10 = vpack.c.bf16 %v3927_v28, %v3918_v22  ;;  %v5024_v28 = vpack.c.bf16 %v3964_v46, %v3949_v37  ;;  %v5028_v37 = vpack.c.bf16 %v3989_v58, %v3980_v52 }
 0x126   : > { %v4128_v18 = vpop.f32.mrf.mxu1  ;;  %v4130_v50 = vmul.f32 %v1102_v57, %v835_v41  ;;  %v5033_v52 = vpack.c.bf16 %v4014_v39, %v4012_v36  ;;  %v5037_v39 = vpack.c.bf16 %v4087_v45, %v4085_v26  ;;  %v3319_v36 = vld [vmem:[#allocation3 + $0x58] sm:$0xff]  ;;  %v3318_v45 = vld [vmem:[#allocation3 + $0x50] sm:$0xff] }
 0x127   : > { %5013 = vst [vmem:[#allocation20_spill] sm:$0xff] %v4128_v18 }
 0x12c   : > { %v4136_v30 = vpop.f32.mrf.mxu2 }
 0x12d   : > { %v1104_v20 = vpop.f32.mrf.mxu3  ;;  %v840_v48 = vpop.f32.mrf.mxu0  ;;  %5015 = vst [vmem:[#allocation22_spill] sm:$0xff] %v4136_v30 }
 0x12e   : > { %v4132_v33 = vmul.f32 %v1104_v20, %v837_v32  ;;  %v4134_v44 = vpop.f32.mrf.mxu1 }
 0x12f   : > { %5014 = vst [vmem:[#allocation21_spill] sm:$0xff] %v4134_v44 }
 0x130   : > { %3021 = vmatmul.msk.bf16.vlgmr.msrb.gmra.mxu0 %vm742_vm0, %v3791_v60 }
 0x131   : > { %3037 = vmatmul.msk.bf16.vlgmr.msrb.gmra.mxu1 %vm742_vm0, %v3791_v60  ;;  %1679 = vmatmul.bf16.vlgmr.msrb.gmra.mxu2 %v5016_v35 }
 0x134   : > { %v4149_v32 = vpop.f32.mrf.mxu2 }
 0x135   : > { %v1107_v41 = vpop.f32.mrf.mxu3  ;;  %v842_v20 = vpop.f32.mrf.mxu0  ;;  %5018 = vst [vmem:[#allocation24_spill] sm:$0xff] %v4149_v32 }
 0x136   : > { %v4147_v57 = vpop.f32.mrf.mxu1  ;;  %v4151_v18 = vmul.f32 %v1107_v41, %v840_v48 }
 0x137   : > { %5017 = vst [vmem:[#allocation23_spill] sm:$0xff] %v4147_v57 }
 0x13c   : > { %v4166_v16 = vpop.f32.mrf.mxu2 }
 0x13d   : > { %v1109_v44 = vpop.f32.mrf.mxu3  ;;  %v845_v30 = vpop.f32.mrf.mxu0 }
 0x13e   : > { %v4153_v5 = vmul.f32 %v1109_v44, %v842_v20  ;;  %v4155_v56 = vpop.f32.mrf.mxu1 }
 0x13f   : > { %5019 = vst [vmem:[#allocation25_spill] sm:$0xff] %v4155_v56 }
 0x140   : > { %3022 = vmatmul.msk.bf16.gmra.mxu0 %vm742_vm0, %v3802_v61 }
 0x141   : > { %3038 = vmatmul.msk.bf16.gmra.mxu1 %vm742_vm0, %v3802_v61  ;;  %1684 = vmatmul.bf16.gmra.mxu2 %v5020_v10 }
 0x144   : > { %v4170_v56 = vpop.f32.mrf.mxu2 }
 0x145   : > { %v1112_v48 = vpop.f32.mrf.mxu3  ;;  %v847_v44 = vpop.f32.mrf.mxu0  ;;  %5022 = vst [vmem:[#allocation27_spill] sm:$0xff] %v4170_v56 }
 0x146   : > { %v4168_v35 = vpop.f32.mrf.mxu1  ;;  %v4172_v60 = vmul.f32 %v1112_v48, %v845_v30 }
 0x147   : > { %5021 = vst [vmem:[#allocation26_spill] sm:$0xff] %v4168_v35 }
 0x14d   : > { %v1114_v41 = vpop.f32.mrf.mxu3  ;;  %v850_v20 = vpop.f32.mrf.mxu0 }
 0x14e   : > { %v4174_v32 = vmul.f32 %v1114_v41, %v847_v44  ;;  %v4176_v57 = vpop.f32.mrf.mxu1  ;;  %v4189_v44 = vpop.f32.mrf.mxu2 }
 0x14f   : > { %5023 = vst [vmem:[#allocation28_spill] sm:$0xff] %v4176_v57 }
 0x150   : > { %3023 = vmatmul.msk.bf16.gmra.mxu0 %vm742_vm0, %v3813_v62  ;;  %5026 = vst [vmem:[#allocation30_spill] sm:$0xff] %v4189_v44 }
 0x151   : > { %3039 = vmatmul.msk.bf16.gmra.mxu1 %vm742_vm0, %v3813_v62  ;;  %1689 = vmatmul.bf16.gmra.mxu2 %v5024_v28 }
 0x155   : > { %v1117_v10 = vpop.f32.mrf.mxu3  ;;  %v852_v30 = vpop.f32.mrf.mxu0 }
 0x156   : > { %v4187_v48 = vpop.f32.mrf.mxu1  ;;  %v4191_v56 = vmul.f32 %v1117_v10, %v850_v20  ;;  %v4206_v46 = vpop.f32.mrf.mxu2 }
 0x157   : > { %5025 = vst [vmem:[#allocation29_spill] sm:$0xff] %v4187_v48 }
 0x158   : > { %5029 = vst [vmem:[#allocation32_spill] sm:$0xff] %v4206_v46 }
 0x15d   : > { %v1119_v41 = vpop.f32.mrf.mxu3  ;;  %v855_v57 = vpop.f32.mrf.mxu0 }
 0x15e   : > { %v4193_v22 = vmul.f32 %v1119_v41, %v852_v30  ;;  %v4195_v35 = vpop.f32.mrf.mxu1  ;;  %v4210_v30 = vpop.f32.mrf.mxu2 }
 0x15f   : > { %5027 = vst [vmem:[#allocation31_spill] sm:$0xff] %v4195_v35 }
 0x160   : > { %3024 = vmatmul.msk.bf16.gmra.mxu0 %vm742_vm0, %v3824_v63  ;;  %5031 = vst [vmem:[#allocation34_spill] sm:$0xff] %v4210_v30 }
 0x161   : > { %3040 = vmatmul.msk.bf16.gmra.mxu1 %vm742_vm0, %v3824_v63  ;;  %1694 = vmatmul.bf16.gmra.mxu2 %v5028_v37 }
 0x165   : > { %v1122_v20 = vpop.f32.mrf.mxu3  ;;  %v857_v28 = vpop.f32.mrf.mxu0 }
 0x166   : > { %v4208_v10 = vpop.f32.mrf.mxu1  ;;  %v4212_v35 = vmul.f32 %v1122_v20, %v855_v57  ;;  %v4227_v37 = vpop.f32.mrf.mxu2 }
 0x167   : > { %5030 = vst [vmem:[#allocation33_spill] sm:$0xff] %v4208_v10 }
 0x16d   : > { %v1124_v41 = vpop.f32.mrf.mxu3  ;;  %v860_v62 = vpop.f32.mrf.mxu0 }
 0x16e   : > { %v4214_v48 = vmul.f32 %v1124_v41, %v857_v28  ;;  %v4216_v44 = vpop.f32.mrf.mxu1  ;;  %v3323_v28 = vld [vmem:[#allocation3 + $0x78] sm:$0xff]  ;;  %v4237_v46 = vpop.f32.mrf.mxu2 }
 0x16f   : > { %5032 = vst [vmem:[#allocation35_spill] sm:$0xff] %v4216_v44  ;;  %1760 = vmatpush.bf16.msrb.mxu3 %v3323_v28  ;;  %v3320_v28 = vld [vmem:[#allocation3 + $0x60] sm:$0xff] }
 0x170   : > { %3025 = vmatmul.msk.bf16.gmra.mxu0 %vm742_vm0, %v3835_v0  ;;  %5036 = vst [vmem:[#allocation38_spill] sm:$0xff] %v4237_v46 }
 0x171   : > { %3041 = vmatmul.msk.bf16.gmra.mxu1 %vm742_vm0, %v3835_v0  ;;  %1699 = vmatmul.bf16.gmra.mxu2 %v5033_v52  ;;  %v3322_v0 = vld [vmem:[#allocation3 + $0x70] sm:$0xff] }
 0x173   : > { %1761 = vmatpush.bf16.msrb.mxu3 %v3322_v0 }
 0x175   : > { %v1127_v58 = vpop.f32.mrf.mxu3  ;;  %v862_v57 = vpop.f32.mrf.mxu0 }
 0x176   : > { %v4229_v20 = vpop.f32.mrf.mxu1  ;;  %v4231_v63 = vmul.f32 %v1127_v58, %v860_v62  ;;  %v3321_v62 = vld [vmem:[#allocation3 + $0x68] sm:$0xff] }
 0x177   : > { %5034 = vst [vmem:[#allocation36_spill] sm:$0xff] %v4229_v20  ;;  %1762 = vmatpush.bf16.msrb.mxu3 %v3321_v62 }
 0x17b   : > { %1763 = vmatpush.bf16.msrb.mxu3 %v3320_v28 }
 0x17d   : > { %v1129_v41 = vpop.f32.mrf.mxu3  ;;  %v865_v44 = vpop.f32.mrf.mxu0 }
 0x17e   : > { %v4233_v10 = vmul.f32 %v1129_v41, %v862_v57  ;;  %v4235_v30 = vpop.f32.mrf.mxu1  ;;  %v4250_v41 = vpop.f32.mrf.mxu2 }
 0x17f   : > { %5035 = vst [vmem:[#allocation37_spill] sm:$0xff] %v4235_v30  ;;  %1764 = vmatpush.bf16.msrb.mxu3 %v3319_v36 }
 0x180   : > { %3026 = vmatmul.msk.bf16.gmra.mxu0 %vm742_vm0, %v3846_v1 }
 0x181   : > { %3042 = vmatmul.msk.bf16.gmra.mxu1 %vm742_vm0, %v3846_v1  ;;  %1704 = vmatmul.bf16.gmra.mxu2 %v5037_v39  ;;  %v5040_v39 = vpack.c.bf16 %v4112_v15, %v4110_v8 }
 0x183   : > { %1765 = vmatpush.bf16.msrb.mxu3 %v3318_v45  ;;  %v5042_v45 = vpack.c.bf16 %v4132_v33, %v4130_v50  ;;  %v5044_v33 = vpack.c.bf16 %v4153_v5, %v4151_v18 }
 0x185   : > { %v1132_v52 = vpop.f32.mrf.mxu3  ;;  %v867_v58 = vpop.f32.mrf.mxu0 }
 0x186   : > { %v4248_v57 = vpop.f32.mrf.mxu1  ;;  %v4252_v46 = vmul.f32 %v1132_v52, %v865_v44  ;;  %v3317_v44 = vld [vmem:[#allocation3 + $0x48] sm:$0xff] }
 0x187   : > { %5038 = vst [vmem:[#allocation39_spill] sm:$0xff] %v4248_v57  ;;  %1766 = vmatpush.bf16.msrb.mxu3 %v3317_v44 }
 0x18d   : > { %v1134_v30 = vpop.f32.mrf.mxu3  ;;  %v870_v20 = vpop.f32.mrf.mxu0 }
 0x18e   : > { %v4254_v1 = vmul.f32 %v1134_v30, %v867_v58  ;;  %v4256_v26 = vpop.f32.mrf.mxu1  ;;  %v4267_v30 = vpop.f32.mrf.mxu2  ;;  %v3316_v58 = vld [vmem:[#allocation3 + $0x40] sm:$0xff] }
 0x18f   : > { %5039 = vst [vmem:[#allocation40_spill] sm:$0xff] %v4256_v26  ;;  %1767 = vmatpush.bf16.msrb.mxu3 %v3316_v58 }
 0x190   : > { %3027 = vmatmul.msk.bf16.gmra.mxu0 %vm742_vm0, %v3857_v2 }
 0x191   : > { %3043 = vmatmul.msk.bf16.gmra.mxu1 %vm742_vm0, %v3857_v2  ;;  %1709 = vmatmul.bf16.gmra.mxu2 %v5040_v39 }
 0x195   : > { %v1137_v62 = vpop.f32.mrf.mxu3  ;;  %v872_v36 = vpop.f32.mrf.mxu0 }
 0x196   : > { %v4269_v52 = vpop.f32.mrf.mxu1  ;;  %v4271_v26 = vmul.f32 %v1137_v62, %v870_v20  ;;  %v4277_v8 = vpop.f32.mrf.mxu2 }
 0x19d   : > { %v1139_v28 = vpop.f32.mrf.mxu3  ;;  %v875_v0 = vpop.f32.mrf.mxu0 }
 0x19e   : > { %v4273_v2 = vmul.f32 %v1139_v28, %v872_v36  ;;  %v4275_v57 = vpop.f32.mrf.mxu1  ;;  %v4290_v62 = vpop.f32.mrf.mxu2 }
 0x19f   : > { %5041 = vst [vmem:[#allocation41_spill] sm:$0xff] %v4275_v57 }
 0x1a0   : > { %3028 = vmatmul.msk.bf16.gmra.mxu0 %vm742_vm0, %v3868_v3 }
 0x1a1   : > { %3044 = vmatmul.msk.bf16.gmra.mxu1 %vm742_vm0, %v3868_v3  ;;  %1714 = vmatmul.bf16.gmra.mxu2 %v5042_v45 }
 0x1a5   : > { %v1142_v20 = vpop.f32.mrf.mxu3  ;;  %v877_v39 = vpop.f32.mrf.mxu0 }
 0x1a6   : > { %v4288_v44 = vpop.f32.mrf.mxu1  ;;  %v4292_v28 = vmul.f32 %v1142_v20, %v875_v0  ;;  %v4305_v50 = vpop.f32.mrf.mxu2 }
 0x1a7   : > { %5043 = vst [vmem:[#allocation42_spill] sm:$0xff] %v4288_v44 }
 0x1ad   : > { %v1144_v36 = vpop.f32.mrf.mxu3  ;;  %v1156_v58 = vpop.f32.mrf.mxu0 }
 0x1ae   : > { %v4294_v15 = vmul.f32 %v1144_v36, %v877_v39  ;;  %v1245_v57 = vpop.f32.mrf.mxu1  ;;  %v1326_v45 = vmul.f32 %v1156_v58, %v3881_v6  ;;  %v4317_v5 = vpop.f32.mrf.mxu2  ;;  %v5045_v6 = vpack.c.bf16 %v4174_v32, %v4172_v60 }
 0x1af   : > { %v4310_v36 = vmul.f32 %v1245_v57, %v3891_v7 }
 0x1b0   : > { %3029 = vmatmul.msk.bf16.gmra.mxu0 %vm742_vm0, %v3879_v4 }
 0x1b1   : > { %3045 = vmatmul.msk.bf16.gmra.mxu1 %vm742_vm0, %v3879_v4  ;;  %1719 = vmatmul.bf16.gmra.mxu2 %v5044_v33 }
 0x1b5   : > { %v1158_v0 = vpop.f32.mrf.mxu0 }
 0x1b6   : > { %v1329_v20 = vmul.f32 %v1158_v0, %v3895_v11  ;;  %v1247_v39 = vpop.f32.mrf.mxu1 }
 0x1b7   : > { %v4313_v3 = vmul.f32 %v1247_v39, %v3897_v12 }
 0x1b8   : > { %v1422_v44 = vpack.c.bf16 %v1329_v20, %v1326_v45 }
 0x1b9   : > { %v1423_v4 = vpack.c.bf16 %v4313_v3, %v4310_v36 }
 0x1ba   : > { %1768 = vmatmul.bf16.vlgmr.msrb.gmra.mxu3 %v1422_v44  ;;  %v4328_v44 = vpop.f32.mrf.mxu2 }
 0x1bd   : > { %v1161_v18 = vpop.f32.mrf.mxu0 }
 0x1be   : > { %v1250_v33 = vpop.f32.mrf.mxu1  ;;  %v1332_v11 = vmul.f32 %v1161_v18, %v3904_v17 }
 0x1bf   : > { %v4331_v58 = vmul.f32 %v1250_v33, %v3916_v19  ;;  %v5046_v19 = vpack.c.bf16 %v4193_v22, %v4191_v56 }
 0x1c0   : > { %3030 = vmatmul.msk.bf16.gmra.mxu0 %vm742_vm0, %v3900_v13 }
 0x1c1   : > { %3046 = vmatmul.msk.bf16.gmra.mxu1 %vm742_vm0, %v3900_v13  ;;  %1724 = vmatmul.bf16.gmra.mxu2 %v5045_v6 }
 0x1c2   : > { %v4340_v17 = vpop.f32.mrf.mxu2 }
 0x1c5   : > { %v1163_v7 = vpop.f32.mrf.mxu0 }
 0x1c6   : > { %v1335_v12 = vmul.f32 %v1163_v7, %v3920_v23  ;;  %v1252_v57 = vpop.f32.mrf.mxu1  ;;  %v3331_v23 = vld [vmem:[#allocation3 + $0xb8] sm:$0xff] }
 0x1c7   : > { %v4334_v0 = vmul.f32 %v1252_v57, %v3922_v24  ;;  %1849 = vmatpush.bf16.msra.mxu0 %v3331_v23  ;;  %v3307_v24 = vld [vmem:[%s4984_s4 + $0x20] sm:$0xff] }
 0x1c8   : > { %v1425_v45 = vpack.c.bf16 %v1335_v12, %v1332_v11  ;;  %1971 = vmatpush.bf16.msra.mxu1 %v3307_v24 }
 0x1c9   : > { %v1426_v13 = vpack.c.bf16 %v4334_v0, %v4331_v58 }
 0x1ca   : > { %1773 = vmatmul.bf16.gmra.mxu3 %v1425_v45  ;;  %v4360_v7 = vpop.f32.mrf.mxu2 }
 0x1cd   : > { %v1166_v60 = vpop.f32.mrf.mxu0 }
 0x1ce   : > { %v1255_v32 = vpop.f32.mrf.mxu1  ;;  %v1338_v39 = vmul.f32 %v1166_v60, %v3929_v29  ;;  %v5047_v29 = vpack.c.bf16 %v4214_v48, %v4212_v35 }
 0x1cf   : > { %v4353_v6 = vmul.f32 %v1255_v32, %v3947_v34 }
 0x1d0   : > { %3031 = vmatmul.msk.bf16.gmra.mxu0 %vm742_vm0, %v3925_v25 }
 0x1d1   : > { %3047 = vmatmul.msk.bf16.gmra.mxu1 %vm742_vm0, %v3925_v25  ;;  %1729 = vmatmul.bf16.gmra.mxu2 %v5046_v19 }
 0x1d2   : > { %v4369_v34 = vpop.f32.mrf.mxu2 }
 0x1d5   : > { %v1168_v20 = vpop.f32.mrf.mxu0 }
 0x1d6   : > { %v1341_v18 = vmul.f32 %v1168_v20, %v3951_v38  ;;  %v1257_v33 = vpop.f32.mrf.mxu1 }
 0x1d7   : > { %v4356_v25 = vmul.f32 %v1257_v33, %v3959_v42 }
 0x1d8   : > { %v1428_v56 = vpack.c.bf16 %v1341_v18, %v1338_v39 }
 0x1d9   : > { %v1429_v22 = vpack.c.bf16 %v4356_v25, %v4353_v6 }
 0x1da   : > { %1778 = vmatmul.bf16.gmra.mxu3 %v1428_v56  ;;  %v4381_v23 = vpop.f32.mrf.mxu2 }
 0x1dd   : > { %v1171_v11 = vpop.f32.mrf.mxu0 }
 0x1de   : > { %v1260_v12 = vpop.f32.mrf.mxu1  ;;  %v1344_v42 = vmul.f32 %v1171_v11, %v3966_v47  ;;  %v5048_v47 = vpack.c.bf16 %v4233_v10, %v4231_v63  ;;  %v3329_v63 = vld [vmem:[#allocation3 + $0xa8] sm:$0xff] }
 0x1df   : > { %v4374_v60 = vmul.f32 %v1260_v12, %v3978_v49  ;;  %v3330_v49 = vld [vmem:[#allocation3 + $0xb0] sm:$0xff] }
 0x1e0   : > { %3032 = vmatmul.msk.bf16.gmra.mxu0 %vm742_vm0, %v3962_v43 }
 0x1e1   : > { %3048 = vmatmul.msk.bf16.gmra.mxu1 %vm742_vm0, %v3962_v43  ;;  %1734 = vmatmul.bf16.gmra.mxu2 %v5047_v29 }
 0x1e2   : > { %1850 = vmatpush.bf16.msra.mxu0 %v3330_v49  ;;  %v3324_v49 = vld [vmem:[#allocation3 + $0x80] sm:$0xff] }
 0x1e5   : > { %v1173_v38 = vpop.f32.mrf.mxu0 }
 0x1e6   : > { %v1347_v57 = vmul.f32 %v1173_v38, %v3982_v53  ;;  %v1262_v45 = vpop.f32.mrf.mxu1  ;;  %1851 = vmatpush.bf16.msra.mxu0 %v3329_v63  ;;  %v3326_v38 = vld [vmem:[#allocation3 + $0x90] sm:$0xff]  ;;  %v5053_v63 = vld [vmem:[#allocation13_spill] sm:$0xff] }
 0x1e7   : > { %v4377_v32 = vmul.f32 %v1262_v45, %v3984_v54  ;;  %v5050_v45 = vld [vmem:[#allocation12_spill] sm:$0xff] }
 0x1e8   : > { %v1431_v19 = vpack.c.bf16 %v1347_v57, %v1344_v42  ;;  %v3305_v42 = vld [vmem:[%s4984_s4 + $0x10] sm:$0xff] }
 0x1e9   : > { %v1432_v43 = vpack.c.bf16 %v4377_v32, %v4374_v60  ;;  %v5077_v32 = vld [vmem:[#allocation38_spill] sm:$0xff] }
 0x1ea   : > { %1783 = vmatmul.bf16.gmra.mxu3 %v1431_v19 }
 0x1ed   : > { %v1176_v35 = vpop.f32.mrf.mxu0 }
 0x1ee   : > { %v1265_v48 = vpop.f32.mrf.mxu1  ;;  %v1350_v54 = vmul.f32 %v1176_v35, %v3991_v59  ;;  %v3328_v59 = vld [vmem:[#allocation3 + $0xa0] sm:$0xff] }
 0x1ef   : > { %v4393_v39 = vmul.f32 %v1265_v48, %v4003_v9  ;;  %1852 = vmatpush.bf16.msra.mxu0 %v3328_v59  ;;  %v5049_v9 = vpack.c.bf16 %v4254_v1, %v4252_v46  ;;  %v5054_v59 = vld [vmem:[#allocation15_spill] sm:$0xff] }
 0x1f0   : > { %3033 = vmatmul.msk.bf16.gmra.mxu0 %vm742_vm0, %v3987_v55 }
 0x1f1   : > { %3049 = vmatmul.msk.bf16.gmra.mxu1 %vm742_vm0, %v3987_v55  ;;  %1739 = vmatmul.bf16.gmra.mxu2 %v5048_v47  ;;  %v4398_v55 = vpop.f32.mrf.mxu2  ;;  %v3325_v47 = vld [vmem:[#allocation3 + $0x88] sm:$0xff] }
 0x1f5   : > { %v1178_v53 = vpop.f32.mrf.mxu0 }
 0x1f6   : > { %v1353_v24 = vmul.f32 %v1178_v53, %v4005_v21  ;;  %v1267_v20 = vpop.f32.mrf.mxu1  ;;  %v3327_v21 = vld [vmem:[#allocation3 + $0x98] sm:$0xff]  ;;  %v3303_v53 = vld [vmem:[%s4984_s4] sm:$0xff] }
 0x1f7   : > { %v4396_v18 = vmul.f32 %v1267_v20, %v4007_v27  ;;  %v3306_v27 = vld [vmem:[%s4984_s4 + $0x18] sm:$0xff]  ;;  %1853 = vmatpush.bf16.msra.mxu0 %v3327_v21  ;;  %v5052_v20 = vpack.c.bf16 %v4273_v2, %v4271_v26 }
 0x1f8   : > { %v1434_v33 = vpack.c.bf16 %v1353_v24, %v1350_v54  ;;  %1972 = vmatpush.bf16.msra.mxu1 %v3306_v27  ;;  %v5051_v24 = vld [vmem:[#allocation11_spill] sm:$0xff]  ;;  %v5055_v27 = vld [vmem:[#allocation14_spill] sm:$0xff] }
 0x1f9   : > { %v1435_v10 = vpack.c.bf16 %v4396_v18, %v4393_v39  ;;  %v4412_v12 = vpop.f32.mrf.mxu2 }
 0x1fa   : > { %1788 = vmatmul.bf16.gmra.mxu3 %v1434_v33 }
 0x1fb   : > { %1854 = vmatpush.bf16.msra.mxu0 %v3326_v38  ;;  %v5056_v38 = vld [vmem:[#allocation16_spill] sm:$0xff] }
 0x1fc   : > { %1973 = vmatpush.bf16.msra.mxu1 %v3305_v42 }
 0x1fd   : > { %v1181_v56 = vpop.f32.mrf.mxu0 }
 0x1fe   : > { %v1270_v11 = vpop.f32.mrf.mxu1 }
 0x1ff   : > { %v4420_v57 = vmul.f32 %v1270_v11, %v4040_v14  ;;  %1855 = vmatpush.bf16.msra.mxu0 %v3325_v47 }
 0x200   : > { %3034 = vmatmul.msk.bf16.gmra.mxu0 %vm742_vm0, %v4010_v31 }
 0x201   : > { %3050 = vmatmul.msk.bf16.gmra.mxu1 %vm742_vm0, %v4010_v31  ;;  %1744 = vmatmul.bf16.gmra.mxu2 %v5049_v9  ;;  %v1356_v31 = vmul.f32 %v1181_v56, %v4016_v40  ;;  %v3304_v40 = vld [vmem:[%s4984_s4 + $0x8] sm:$0xff] }
 0x202   : > { %1974 = vmatpush.bf16.msra.mxu1 %v3304_v40  ;;  %v5059_v40 = vld [vmem:[#allocation18_spill] sm:$0xff] }
 0x203   : > { %1856 = vmatpush.bf16.msra.mxu0 %v3324_v49  ;;  %v5060_v49 = vld [vmem:[#allocation20_spill] sm:$0xff] }
 0x205   : > { %v1183_v29 = vpop.f32.mrf.mxu0 }
 0x206   : > { %v1359_v46 = vmul.f32 %v1183_v29, %v4054_v51  ;;  %v1272_v1 = vpop.f32.mrf.mxu1  ;;  %v4430_v51 = vpop.f32.mrf.mxu2  ;;  %1975 = vmatpush.bf16.msra.mxu1 %v3303_v53 }
 0x207   : > { %v4423_v19 = vmul.f32 %v1272_v1, %v5050_v45  ;;  %v5057_v1 = vld [vmem:[#allocation17_spill] sm:$0xff] }
 0x208   : > { %v1437_v35 = vpack.c.bf16 %v1359_v46, %v1356_v31 }
 0x209   : > { %v1438_v48 = vpack.c.bf16 %v4423_v19, %v4420_v57 }
 0x20a   : > { %1793 = vmatmul.bf16.gmra.mxu3 %v1437_v35  ;;  %v5058_v35 = vpack.c.bf16 %v4294_v15, %v4292_v28  ;;  %v5063_v28 = vld [vmem:[#allocation10_spill] sm:$0xff] }
 0x20d   : > { %v1186_v14 = vpop.f32.mrf.mxu0 }
 0x20e   : > { %v1275_v54 = vpop.f32.mrf.mxu1  ;;  %v1362_v56 = vmul.f32 %v1186_v14, %v5053_v63  ;;  %v4444_v21 = vpop.f32.mrf.mxu2 }
 0x20f   : > { %v4447_v29 = vmul.f32 %v1275_v54, %v5055_v27  ;;  %v5064_v27 = vld [vmem:[#allocation21_spill] sm:$0xff] }
 0x210   : > { %3035 = vmatmul.msk.bf16.gmra.mxu0 %vm742_vm0, %v5051_v24 }
 0x211   : > { %3051 = vmatmul.msk.bf16.gmra.mxu1 %vm742_vm0, %v5051_v24  ;;  %1749 = vmatmul.bf16.gmra.mxu2 %v5052_v20  ;;  %v5061_v24 = vld [vmem:[#allocation19_spill] sm:$0xff] }
 0x215   : > { %v1188_v33 = vpop.f32.mrf.mxu0 }
 0x216   : > { %v1365_v11 = vmul.f32 %v1188_v33, %v5054_v59  ;;  %v1277_v9 = vpop.f32.mrf.mxu1  ;;  %v4456_v45 = vpop.f32.mrf.mxu2  ;;  %v5062_v33 = vld [vmem:[#allocation22_spill] sm:$0xff] }
 0x217   : > { %v4450_v42 = vmul.f32 %v1277_v9, %v5056_v38 }
 0x218   : > { %v1440_v31 = vpack.c.bf16 %v1365_v11, %v1362_v56 }
 0x219   : > { %v1441_v46 = vpack.c.bf16 %v4450_v42, %v4447_v29 }
 0x21a   : > { %1798 = vmatmul.bf16.gmra.mxu3 %v1440_v31  ;;  %v5065_v31 = vld [vmem:[#allocation23_spill] sm:$0xff] }
 0x21d   : > { %v1191_v26 = vpop.f32.mrf.mxu0 }
 0x21e   : > { %v1280_v2 = vpop.f32.mrf.mxu1  ;;  %v1368_v14 = vmul.f32 %v1191_v26, %v5059_v40 }
 0x21f   : > { %v4466_v20 = vmul.f32 %v1280_v2, %v5061_v24 }
 0x220   : > { %3036 = vmatmul.msk.bf16.gmra.mxu0 %vm742_vm0, %v5057_v1 }
 0x221   : > { %3052 = vmatmul.msk.bf16.gmra.mxu1 %vm742_vm0, %v5057_v1  ;;  %1754 = vmatmul.bf16.gmra.mxu2 %v5058_v35  ;;  %v5066_v1 = vld [vmem:[#allocation24_spill] sm:$0xff] }
 0x225   : > { %v1193_v47 = vpop.f32.mrf.mxu0 }
 0x226   : > { %v1371_v53 = vmul.f32 %v1193_v47, %v5060_v49  ;;  %v1282_v54 = vpop.f32.mrf.mxu1  ;;  %v5067_v49 = vld [vmem:[#allocation25_spill] sm:$0xff] }
 0x227   : > { %v4469_v63 = vmul.f32 %v1282_v54, %v5062_v33  ;;  %v5069_v33 = vld [vmem:[#allocation27_spill] sm:$0xff] }
 0x228   : > { %v1443_v56 = vpack.c.bf16 %v1371_v53, %v1368_v14 }
 0x229   : > { %v1444_v59 = vpack.c.bf16 %v4469_v63, %v4466_v20 }
 0x22a   : > { %1803 = vmatmul.bf16.gmra.mxu3 %v1443_v56 }
 0x22d   : > { %v1196_v11 = vpop.f32.mrf.mxu0 }
 0x22e   : > { %v1285_v15 = vpop.f32.mrf.mxu1  ;;  %v1374_v38 = vmul.f32 %v1196_v11, %v5064_v27  ;;  %v5070_v11 = vld [vmem:[#allocation30_spill] sm:$0xff] }
 0x22f   : > { %v4481_v35 = vmul.f32 %v1285_v15, %v5066_v1 }
 0x230   : > { %1857 = vmatmul.bf16.vlgmr.msra.gmra.mxu0 %v1423_v4 }
 0x231   : > { %3169 = vmatmul.msk.bf16.vlgmr.msra.gmra.mxu1 %vm742_vm0, %v5063_v28 }
 0x235   : > { %v1198_v9 = vpop.f32.mrf.mxu0 }
 0x236   : > { %v1377_v26 = vmul.f32 %v1198_v9, %v5065_v31  ;;  %v1287_v2 = vpop.f32.mrf.mxu1  ;;  %v4508_v9 = vpop.f32.mrf.mxu2 }
 0x237   : > { %v4484_v47 = vmul.f32 %v1287_v2, %v4166_v16  ;;  %v5068_v16 = vld [vmem:[#allocation26_spill] sm:$0xff] }
 0x238   : > { %v1446_v40 = vpack.c.bf16 %v1377_v26, %v1374_v38  ;;  %v5071_v38 = vld [vmem:[#allocation28_spill] sm:$0xff]  ;;  %v5072_v26 = vld [vmem:[#allocation29_spill] sm:$0xff] }
 0x239   : > { %v1447_v3 = vpack.c.bf16 %v4484_v47, %v4481_v35 }
 0x23a   : > { %1808 = vmatmul.bf16.gmra.mxu3 %v1446_v40  ;;  %v5073_v40 = vld [vmem:[#allocation32_spill] sm:$0xff] }
 0x23d   : > { %v1201_v36 = vpop.f32.mrf.mxu0 }
 0x23e   : > { %v1290_v4 = vpop.f32.mrf.mxu1  ;;  %v1380_v53 = vmul.f32 %v1201_v36, %v5067_v49 }
 0x23f   : > { %v4496_v56 = vmul.f32 %v1290_v4, %v5069_v33  ;;  %v5074_v4 = vld [vmem:[#allocation34_spill] sm:$0xff] }
 0x240   : > { %1862 = vmatmul.bf16.gmra.mxu0 %v1426_v13 }
 0x241   : > { %3170 = vmatmul.msk.bf16.gmra.mxu1 %vm742_vm0, %v3802_v61  ;;  %v3420_v61 = vld [vmem:[%s3788_s20 + $0x10] sm:$0xff] }
 0x245   : > { %v1203_v14 = vpop.f32.mrf.mxu0 }
 0x246   : > { %v1383_v54 = vmul.f32 %v1203_v14, %v5068_v16  ;;  %v1292_v24 = vpop.f32.mrf.mxu1  ;;  %v3421_v16 = vld [vmem:[%s3788_s20 + $0x18] sm:$0xff] }
 0x247   : > { %v4499_v15 = vmul.f32 %v1292_v24, %v5070_v11  ;;  %v4530_v24 = vpop.f32.mrf.mxu3  ;;  %v5075_v11 = vld [vmem:[#allocation31_spill] sm:$0xff] }
 0x248   : > { %v1449_v28 = vpack.c.bf16 %v1383_v54, %v1380_v53  ;;  %v4520_v53 = vpop.f32.mrf.mxu2  ;;  %v3339_v54 = vld [vmem:[%s4986_s6 + $0x38] sm:$0xff] }
 0x249   : > { %v1450_v58 = vpack.c.bf16 %v4499_v15, %v4496_v56  ;;  %2209 = vmatpush.bf16.msra.mxu2 %v3339_v54 }
 0x24a   : > { %1813 = vmatmul.bf16.gmra.mxu3 %v1449_v28 }
 0x24d   : > { %v1206_v0 = vpop.f32.mrf.mxu0 }
 0x24e   : > { %v1295_v13 = vpop.f32.mrf.mxu1  ;;  %v1386_v31 = vmul.f32 %v1206_v0, %v5071_v38  ;;  %v5076_v0 = vld [vmem:[#allocation33_spill] sm:$0xff] }
 0x24f   : > { %v4513_v36 = vmul.f32 %v1295_v13, %v5073_v40 }
 0x250   : > { %1867 = vmatmul.bf16.gmra.mxu0 %v1429_v22  ;;  %v4540_v38 = vpop.f32.mrf.mxu2 }
 0x251   : > { %3171 = vmatmul.msk.bf16.gmra.mxu1 %vm742_vm0, %v3420_v61 }
 0x255   : > { %v1208_v27 = vpop.f32.mrf.mxu0 }
 0x256   : > { %v1389_v2 = vmul.f32 %v1208_v27, %v5072_v26  ;;  %v1297_v1 = vpop.f32.mrf.mxu1 }
 0x257   : > { %v4516_v14 = vmul.f32 %v1297_v1, %v5074_v4 }
 0x258   : > { %v1452_v6 = vpack.c.bf16 %v1389_v2, %v1386_v31  ;;  %v4544_v2 = vpop.f32.mrf.mxu3  ;;  %v4551_v40 = vpop.f32.mrf.mxu2 }
 0x259   : > { %v1453_v25 = vpack.c.bf16 %v4516_v14, %v4513_v36 }
 0x25a   : > { %1818 = vmatmul.bf16.gmra.mxu3 %v1452_v6  ;;  %v5078_v6 = vld [vmem:[#allocation35_spill] sm:$0xff] }
 0x25d   : > { %v1211_v22 = vpop.f32.mrf.mxu0 }
 0x25e   : > { %v1300_v49 = vpop.f32.mrf.mxu1  ;;  %v1392_v28 = vmul.f32 %v1211_v22, %v5075_v11 }
 0x25f   : > { %v4535_v60 = vmul.f32 %v1300_v49, %v4227_v37  ;;  %v3422_v37 = vld [vmem:[%s3788_s20 + $0x20] sm:$0xff]  ;;  %v5079_v49 = vld [vmem:[#allocation36_spill] sm:$0xff] }
 0x260   : > { %1872 = vmatmul.bf16.gmra.mxu0 %v1432_v43  ;;  %v4561_v39 = vpop.f32.mrf.mxu3 }
 0x261   : > { %3172 = vmatmul.msk.bf16.gmra.mxu1 %vm742_vm0, %v3421_v16 }
 0x265   : > { %v1213_v33 = vpop.f32.mrf.mxu0 }
 0x266   : > { %v1395_v13 = vmul.f32 %v1213_v33, %v5076_v0  ;;  %v1302_v61 = vpop.f32.mrf.mxu1 }
 0x267   : > { %v4538_v43 = vmul.f32 %v1302_v61, %v5077_v32 }
 0x268   : > { %v1455_v27 = vpack.c.bf16 %v1395_v13, %v1392_v28  ;;  %v4565_v28 = vpop.f32.mrf.mxu2  ;;  %v4575_v61 = vpop.f32.mrf.mxu3 }
 0x269   : > { %v1456_v31 = vpack.c.bf16 %v4538_v43, %v4535_v60 }
 0x26a   : > { %1823 = vmatmul.bf16.gmra.mxu3 %v1455_v27  ;;  %v5080_v27 = vld [vmem:[#allocation37_spill] sm:$0xff] }
 0x26d   : > { %v1216_v26 = vpop.f32.mrf.mxu0 }
 0x26e   : > { %v1305_v1 = vpop.f32.mrf.mxu1  ;;  %v1398_v22 = vmul.f32 %v1216_v26, %v5078_v6 }
 0x26f   : > { %v4556_v33 = vmul.f32 %v1305_v1, %v4250_v41  ;;  %v3423_v41 = vld [vmem:[%s3788_s20 + $0x28] sm:$0xff]  ;;  %v5081_v1 = vld [vmem:[#allocation39_spill] sm:$0xff] }
 0x270   : > { %1877 = vmatmul.bf16.gmra.mxu0 %v1435_v10  ;;  %v4579_v6 = vpop.f32.mrf.mxu2 }
 0x271   : > { %3173 = vmatmul.msk.bf16.gmra.mxu1 %vm742_vm0, %v3422_v37 }
 0x275   : > { %v1218_v4 = vpop.f32.mrf.mxu0 }
 0x276   : > { %v1401_v16 = vmul.f32 %v1218_v4, %v5079_v49  ;;  %v1307_v54 = vpop.f32.mrf.mxu1  ;;  %v3337_v49 = vld [vmem:[%s4986_s6 + $0x28] sm:$0xff] }
 0x277   : > { %v4559_v11 = vmul.f32 %v1307_v54, %v4267_v30  ;;  %v3338_v30 = vld [vmem:[%s4986_s6 + $0x30] sm:$0xff] }
 0x278   : > { %v1458_v18 = vpack.c.bf16 %v1401_v16, %v1398_v22  ;;  %2210 = vmatpush.bf16.msra.mxu2 %v3338_v30  ;;  %v4592_v16 = vpop.f32.mrf.mxu3  ;;  %v3334_v30 = vld [vmem:[%s4986_s6 + $0x10] sm:$0xff] }
 0x279   : > { %v1459_v10 = vpack.c.bf16 %v4559_v11, %v4556_v33 }
 0x27a   : > { %1828 = vmatmul.bf16.gmra.mxu3 %v1458_v18 }
 0x27c   : > { %2211 = vmatpush.bf16.msra.mxu2 %v3337_v49 }
 0x27d   : > { %v1221_v0 = vpop.f32.mrf.mxu0 }
 0x27e   : > { %v1310_v13 = vpop.f32.mrf.mxu1  ;;  %v1404_v26 = vmul.f32 %v1221_v0, %v5080_v27  ;;  %v3424_v0 = vld [vmem:[%s3788_s20 + $0x30] sm:$0xff]  ;;  %v5082_v27 = vld [vmem:[#allocation40_spill] sm:$0xff] }
 0x27f   : > { %v4582_v57 = vmul.f32 %v1310_v13, %v4277_v8  ;;  %v3336_v8 = vld [vmem:[%s4986_s6 + $0x20] sm:$0xff]  ;;  %v3335_v13 = vld [vmem:[%s4986_s6 + $0x18] sm:$0xff] }
 0x280   : > { %1882 = vmatmul.bf16.gmra.mxu0 %v1438_v48  ;;  %2212 = vmatpush.bf16.msra.mxu2 %v3336_v8  ;;  %v3425_v8 = vld [vmem:[%s3788_s20 + $0x38] sm:$0xff] }
 0x281   : > { %3174 = vmatmul.msk.bf16.gmra.mxu1 %vm742_vm0, %v3423_v41 }
 0x284   : > { %2213 = vmatpush.bf16.msra.mxu2 %v3335_v13  ;;  %v5083_v13 = vld [vmem:[#allocation41_spill] sm:$0xff] }
 0x285   : > { %v1223_v32 = vpop.f32.mrf.mxu0 }
 0x286   : > { %v1407_v37 = vmul.f32 %v1223_v32, %v5081_v1  ;;  %v1312_v4 = vpop.f32.mrf.mxu1  ;;  %v4610_v32 = vpop.f32.mrf.mxu3 }
 0x287   : > { %v4585_v19 = vmul.f32 %v1312_v4, %v4290_v62  ;;  %v4600_v62 = vpop.f32.mrf.mxu2 }
 0x288   : > { %v1461_v48 = vpack.c.bf16 %v1407_v37, %v1404_v26  ;;  %2214 = vmatpush.bf16.msra.mxu2 %v3334_v30  ;;  %v5084_v30 = vld [vmem:[#allocation42_spill] sm:$0xff] }
 0x289   : > { %v1462_v22 = vpack.c.bf16 %v4585_v19, %v4582_v57 }
 0x28a   : > { %1833 = vmatmul.bf16.gmra.mxu3 %v1461_v48  ;;  %v3333_v48 = vld [vmem:[%s4986_s6 + $0x8] sm:$0xff] }
 0x28c   : > { %2215 = vmatpush.bf16.msra.mxu2 %v3333_v48  ;;  %v1770_v48 = vadd.f32 %v4530_v24, %v4360_v7 }
 0x28d   : > { %v1226_v54 = vpop.f32.mrf.mxu0 }
 0x28e   : > { %v1315_v18 = vpop.f32.mrf.mxu1  ;;  %v1410_v29 = vmul.f32 %v1226_v54, %v5082_v27  ;;  %v4630_v54 = vpop.f32.mrf.mxu3 }
 0x28f   : > { %v4615_v26 = vmul.f32 %v1315_v18, %v4305_v50  ;;  %v4625_v49 = vpop.f32.mrf.mxu2  ;;  %v3332_v50 = vld [vmem:[%s4986_s6] sm:$0xff] }
 0x290   : > { %1887 = vmatmul.bf16.gmra.mxu0 %v1441_v46  ;;  %2216 = vmatpush.bf16.msra.mxu2 %v3332_v50 }
 0x291   : > { %3175 = vmatmul.msk.bf16.gmra.mxu1 %vm742_vm0, %v3424_v0 }
 0x295   : > { %v1228_v41 = vpop.f32.mrf.mxu0 }
 0x296   : > { %v1413_v42 = vmul.f32 %v1228_v41, %v4269_v52  ;;  %v1317_v46 = vpop.f32.mrf.mxu1 }
 0x297   : > { %v4618_v1 = vmul.f32 %v1317_v46, %v4317_v5  ;;  %v4637_v18 = vpop.f32.mrf.mxu2 }
 0x298   : > { %v1464_v37 = vpack.c.bf16 %v1413_v42, %v1410_v29 }
 0x299   : > { %v1465_v4 = vpack.c.bf16 %v4618_v1, %v4615_v26 }
 0x29a   : > { %1838 = vmatmul.bf16.gmra.mxu3 %v1464_v37 }
 0x29d   : > { %v1231_v52 = vpop.f32.mrf.mxu0 }
 0x29e   : > { %v1320_v5 = vpop.f32.mrf.mxu1  ;;  %v1416_v41 = vmul.f32 %v1231_v52, %v5083_v13 }
 0x29f   : > { %v4642_v42 = vmul.f32 %v1320_v5, %v4328_v44  ;;  %v4653_v50 = vpop.f32.mrf.mxu2  ;;  %v3426_v44 = vld [vmem:[%s3788_s20 + $0x40] sm:$0xff] }
 0x2a0   : > { %1892 = vmatmul.bf16.gmra.mxu0 %v1444_v59  ;;  %v4649_v59 = vpop.f32.mrf.mxu3 }
 0x2a1   : > { %3176 = vmatmul.msk.bf16.gmra.mxu1 %vm742_vm0, %v3425_v8 }
 0x2a5   : > { %v1233_v0 = vpop.f32.mrf.mxu0 }
 0x2a6   : > { %v1419_v27 = vmul.f32 %v1233_v0, %v5084_v30  ;;  %v1322_v29 = vpop.f32.mrf.mxu1  ;;  %v4665_v0 = vld [vmem:[%s4985_s5] ss:$0 sm:$0xff] }
 0x2a7   : > { %v4645_v46 = vmul.f32 %v1322_v29, %v4340_v17  ;;  %v1772_v17 = vadd.f32 %v4544_v2, %v4369_v34  ;;  %v4668_v47 = vpop.f32.mrf.mxu2  ;;  %v1775_v29 = vadd.f32 %v4561_v39, %v4381_v23 }
 0x2a8   : > { %v1467_v20 = vpack.c.bf16 %v1419_v27, %v1416_v41  ;;  %v4671_v30 = vpop.f32.mrf.mxu3 }
 0x2a9   : > { %v1468_v63 = vpack.c.bf16 %v4645_v46, %v4642_v42  ;;  %v3342_v42 = vld [vmem:[%s4988_s8 + $0x10] sm:$0xff] }
 0x2aa   : > { %1843 = vmatmul.bf16.gmra.mxu3 %v1467_v20 }
 0x2ad   : > { %v1858_v37 = vpop.f32.mrf.mxu0 }
 0x2ae   : > { %v1977_v52 = vpop.f32.mrf.mxu1  ;;  %v1859_v8 = vadd.f32 %v1858_v37, %v1770_v48 }
 0x2b0   : > { %1897 = vmatmul.bf16.gmra.mxu0 %v1447_v3  ;;  %v1978_v5 = vadd.f32 %v1977_v52, %v1859_v8  ;;  %v3427_v52 = vld [vmem:[%s3788_s20 + $0x48] sm:$0xff]  ;;  %v4680_v8 = vpop.f32.mrf.mxu2 }
 0x2b1   : > { %3177 = vmatmul.msk.bf16.gmra.mxu1 %vm742_vm0, %v3426_v44  ;;  %v1777_v44 = vadd.f32 %v4575_v61, %v4398_v55  ;;  %v1780_v55 = vadd.f32 %v4592_v16, %v4412_v12 }
 0x2b2   : > { %v2061_v41 = vadd.f32 %v4665_v0, %v1978_v5  ;;  %v4684_v5 = vpop.f32.mrf.mxu3 }
 0x2b4   : > { %v2093_v34 = vmax.f32 %v2061_v41, 0.0 }
 0x2b5   : > { %v1860_v7 = vpop.f32.mrf.mxu0 }
 0x2b6   : > { %v1861_v24 = vadd.f32 %v1860_v7, %v1772_v17  ;;  %v1979_v13 = vpop.f32.mrf.mxu1 }
 0x2b8   : > { %v1980_v35 = vadd.f32 %v1979_v13, %v1861_v24  ;;  %v4688_v41 = vpop.f32.mrf.mxu2 }
 0x2ba   : > { %v2062_v3 = vadd.f32 %v4665_v0, %v1980_v35 }
 0x2bc   : > { %v2094_v2 = vmax.f32 %v2062_v3, 0.0 }
 0x2bd   : > { %v1863_v27 = vpop.f32.mrf.mxu0 }
 0x2be   : > { %v2125_v20 = vpack.c.bf16 %v2094_v2, %v2093_v34  ;;  %v1982_v37 = vpop.f32.mrf.mxu1  ;;  %v1864_v48 = vadd.f32 %v1863_v27, %v1775_v29  ;;  %v4692_v34 = vpop.f32.mrf.mxu3  ;;  %v3428_v27 = vld [vmem:[%s3788_s20 + $0x50] sm:$0xff]  ;;  %v1782_v29 = vadd.f32 %v4610_v32, %v4430_v51 }
 0x2c0   : > { %1902 = vmatmul.bf16.gmra.mxu0 %v1450_v58  ;;  %2217 = vmatmul.bf16.vlgmr.msra.gmra.mxu2 %v2125_v20  ;;  %v1983_v17 = vadd.f32 %v1982_v37, %v1864_v48  ;;  %v4701_v16 = vpop.f32.mrf.mxu2 }
 0x2c1   : > { %3178 = vmatmul.msk.bf16.gmra.mxu1 %vm742_vm0, %v3427_v52 }
 0x2c2   : > { %v2063_v24 = vadd.f32 %v4665_v0, %v1983_v17 }
 0x2c4   : > { %v2095_v58 = vmax.f32 %v2063_v24, 0.0 }
 0x2c5   : > { %v1865_v23 = vpop.f32.mrf.mxu0 }
 0x2c6   : > { %v1866_v39 = vadd.f32 %v1865_v23, %v1777_v44  ;;  %v1984_v7 = vpop.f32.mrf.mxu1  ;;  %v1796_v17 = vpop.f32.mrf.mxu3 }
 0x2c8   : > { %v1985_v56 = vadd.f32 %v1984_v7, %v1866_v39  ;;  %v1785_v39 = vadd.f32 %v4630_v54, %v4444_v21  ;;  %v4710_v24 = vpop.f32.mrf.mxu2 }
 0x2ca   : > { %v2064_v15 = vadd.f32 %v4665_v0, %v1985_v56  ;;  %v3429_v56 = vld [vmem:[%s3788_s20 + $0x58] sm:$0xff] }
 0x2cc   : > { %v2096_v13 = vmax.f32 %v2064_v15, 0.0 }
 0x2cd   : > { %v1868_v35 = vpop.f32.mrf.mxu0 }
 0x2ce   : > { %v1987_v61 = vpop.f32.mrf.mxu1  ;;  %v2126_v3 = vpack.c.bf16 %v2096_v13, %v2095_v58  ;;  %v1869_v2 = vadd.f32 %v1868_v35, %v1780_v55  ;;  %v1799_v15 = vpop.f32.mrf.mxu3  ;;  %v1787_v58 = vadd.f32 %v4649_v59, %v4456_v45 }
 0x2d0   : > { %1907 = vmatmul.bf16.gmra.mxu0 %v1453_v25  ;;  %2222 = vmatmul.bf16.gmra.mxu2 %v2126_v3  ;;  %v1988_v20 = vadd.f32 %v1987_v61, %v1869_v2  ;;  %v4718_v43 = vpop.f32.mrf.mxu2 }
 0x2d1   : > { %3179 = vmatmul.msk.bf16.gmra.mxu1 %vm742_vm0, %v3428_v27 }
 0x2d2   : > { %v2065_v52 = vadd.f32 %v4665_v0, %v1988_v20 }
 0x2d4   : > { %v2097_v14 = vmax.f32 %v2065_v52, 0.0  ;;  %v3347_v52 = vld [vmem:[%s4988_s8 + $0x38] sm:$0xff] }
 0x2d5   : > { %v1870_v37 = vpop.f32.mrf.mxu0  ;;  %2414 = vmatpush.bf16.msra.mxu3 %v3347_v52 }
 0x2d6   : > { %v1871_v48 = vadd.f32 %v1870_v37, %v1782_v29  ;;  %v1989_v12 = vpop.f32.mrf.mxu1  ;;  %v1801_v2 = vpop.f32.mrf.mxu3  ;;  %v1790_v29 = vadd.f32 %v4671_v30, %v4508_v9  ;;  %v3430_v37 = vld [vmem:[%s3788_s20 + $0x60] sm:$0xff] }
 0x2d8   : > { %v1990_v44 = vadd.f32 %v1989_v12, %v1871_v48  ;;  %v1792_v48 = vadd.f32 %v4684_v5, %v4520_v53  ;;  %v4732_v9 = vpop.f32.mrf.mxu2 }
 0x2da   : > { %v2066_v36 = vadd.f32 %v4665_v0, %v1990_v44 }
 0x2dc   : > { %v2098_v25 = vmax.f32 %v2066_v36, 0.0 }
 0x2dd   : > { %v1873_v23 = vpop.f32.mrf.mxu0 }
 0x2de   : > { %v1992_v51 = vpop.f32.mrf.mxu1  ;;  %v2127_v32 = vpack.c.bf16 %v2098_v25, %v2097_v14  ;;  %v1874_v7 = vadd.f32 %v1873_v23, %v1785_v39  ;;  %v1804_v33 = vpop.f32.mrf.mxu3  ;;  %v1795_v23 = vadd.f32 %v4692_v34, %v4540_v38 }
 0x2e0   : > { %1912 = vmatmul.bf16.gmra.mxu0 %v1456_v31  ;;  %2227 = vmatmul.bf16.gmra.mxu2 %v2127_v32  ;;  %v1993_v13 = vadd.f32 %v1992_v51, %v1874_v7  ;;  %v4738_v32 = vpop.f32.mrf.mxu2 }
 0x2e1   : > { %3180 = vmatmul.msk.bf16.gmra.mxu1 %vm742_vm0, %v3429_v56 }
 0x2e2   : > { %v2067_v55 = vadd.f32 %v4665_v0, %v1993_v13  ;;  %v1797_v13 = vadd.f32 %v1796_v17, %v4551_v40 }
 0x2e4   : > { %v2099_v31 = vmax.f32 %v2067_v55, 0.0 }
 0x2e5   : > { %v1875_v35 = vpop.f32.mrf.mxu0 }
 0x2e6   : > { %v1876_v21 = vadd.f32 %v1875_v35, %v1787_v58  ;;  %v1994_v54 = vpop.f32.mrf.mxu1  ;;  %v1806_v56 = vpop.f32.mrf.mxu3  ;;  %v3431_v58 = vld [vmem:[%s3788_s20 + $0x68] sm:$0xff] }
 0x2e8   : > { %v1995_v61 = vadd.f32 %v1994_v54, %v1876_v21 }
 0x2ea   : > { %v2068_v60 = vadd.f32 %v4665_v0, %v1995_v61  ;;  %v4747_v61 = vpop.f32.mrf.mxu2 }
 0x2ec   : > { %v2100_v3 = vmax.f32 %v2068_v60, 0.0 }
 0x2ed   : > { %v1878_v27 = vpop.f32.mrf.mxu0 }
 0x2ee   : > { %v1997_v45 = vpop.f32.mrf.mxu1  ;;  %v2128_v59 = vpack.c.bf16 %v2100_v3, %v2099_v31  ;;  %v1879_v20 = vadd.f32 %v1878_v27, %v1790_v29  ;;  %v1809_v19 = vpop.f32.mrf.mxu3  ;;  %v1800_v3 = vadd.f32 %v1799_v15, %v4565_v28  ;;  %v3432_v29 = vld [vmem:[%s3788_s20 + $0x70] sm:$0xff] }
 0x2ef   : > { %v3346_v28 = vld [vmem:[%s4988_s8 + $0x30] sm:$0xff] }
 0x2f0   : > { %1917 = vmatmul.bf16.gmra.mxu0 %v1459_v10  ;;  %2232 = vmatmul.bf16.gmra.mxu2 %v2128_v59  ;;  %v1998_v12 = vadd.f32 %v1997_v45, %v1879_v20  ;;  %v1802_v59 = vadd.f32 %v1801_v2, %v4579_v6  ;;  %v3345_v6 = vld [vmem:[%s4988_s8 + $0x28] sm:$0xff] }
 0x2f1   : > { %3181 = vmatmul.msk.bf16.gmra.mxu1 %vm742_vm0, %v3430_v37  ;;  %2415 = vmatpush.bf16.msra.mxu3 %v3346_v28 }
 0x2f2   : > { %v2069_v11 = vadd.f32 %v4665_v0, %v1998_v12  ;;  %v4756_v45 = vpop.f32.mrf.mxu2 }
 0x2f4   : > { %v2101_v25 = vmax.f32 %v2069_v11, 0.0 }
 0x2f5   : > { %v1880_v30 = vpop.f32.mrf.mxu0  ;;  %2416 = vmatpush.bf16.msra.mxu3 %v3345_v6 }
 0x2f6   : > { %v1881_v44 = vadd.f32 %v1880_v30, %v1792_v48  ;;  %v1999_v36 = vpop.f32.mrf.mxu1  ;;  %v1811_v15 = vpop.f32.mrf.mxu3 }
 0x2f8   : > { %v2000_v10 = vadd.f32 %v1999_v36, %v1881_v44  ;;  %v1805_v36 = vadd.f32 %v1804_v33, %v4600_v62  ;;  %v3343_v62 = vld [vmem:[%s4988_s8 + $0x18] sm:$0xff]  ;;  %v1807_v33 = vadd.f32 %v1806_v56, %v4625_v49  ;;  %v3341_v49 = vld [vmem:[%s4988_s8 + $0x8] sm:$0xff] }
 0x2fa   : > { %v2070_v14 = vadd.f32 %v4665_v0, %v2000_v10  ;;  %v4767_v30 = vpop.f32.mrf.mxu2 }
 0x2fc   : > { %v2102_v53 = vmax.f32 %v2070_v14, 0.0 }
 0x2fd   : > { %v1883_v5 = vpop.f32.mrf.mxu0 }
 0x2fe   : > { %v2002_v39 = vpop.f32.mrf.mxu1  ;;  %v2129_v51 = vpack.c.bf16 %v2102_v53, %v2101_v25  ;;  %v1884_v7 = vadd.f32 %v1883_v5, %v1795_v23  ;;  %v1814_v14 = vpop.f32.mrf.mxu3  ;;  %v3344_v25 = vld [vmem:[%s4988_s8 + $0x20] sm:$0xff]  ;;  %v3433_v5 = vld [vmem:[%s3788_s20 + $0x78] sm:$0xff]  ;;  %s2769_s20 = sshll.u32 %s436_s27, 2 }
 0x2ff   : > { %2417 = vmatpush.bf16.msra.mxu3 %v3344_v25  ;;  %s4933_s22 = scalar_lea.vmem [#allocation6], %s2769_s20 }
 0x300   : > { %1922 = vmatmul.bf16.gmra.mxu0 %v1462_v22  ;;  %2237 = vmatmul.bf16.gmra.mxu2 %v2129_v51  ;;  %v2003_v35 = vadd.f32 %v2002_v39, %v1884_v7  ;;  %s2677_s20 = sshll.u32 %s4933_s22, 4  ;;  %s2678_s20 = int_to_ptr.vmem [resolvable:$true] %s2677_s20 }
 0x301   : > { %3182 = vmatmul.msk.bf16.gmra.mxu1 %vm742_vm0, %v3431_v58 }
 0x302   : > { %v2071_v34 = vadd.f32 %v4665_v0, %v2003_v35  ;;  %v4782_v58 = vpop.f32.mrf.mxu2 }
 0x303   : > { %2418 = vmatpush.bf16.msra.mxu3 %v3343_v62 }
 0x304   : > { %v2103_v22 = vmax.f32 %v2071_v34, 0.0 }
 0x305   : > { %v1885_v21 = vpop.f32.mrf.mxu0 }
 0x306   : > { %v1886_v54 = vadd.f32 %v1885_v21, %v1797_v13  ;;  %v2004_v38 = vpop.f32.mrf.mxu1  ;;  %v1816_v13 = vpop.f32.mrf.mxu3 }
 0x307   : > { %2419 = vmatpush.bf16.msra.mxu3 %v3342_v42  ;;  %v1817_v6 = vadd.f32 %v1816_v13, %v4680_v8 }
 0x308   : > { %v2005_v55 = vadd.f32 %v2004_v38, %v1886_v54  ;;  %v1810_v38 = vadd.f32 %v1809_v19, %v4637_v18 }
 0x30a   : > { %v2072_v57 = vadd.f32 %v4665_v0, %v2005_v55 }
 0x30b   : > { %2420 = vmatpush.bf16.msra.mxu3 %v3341_v49 }
 0x30c   : > { %v2104_v60 = vmax.f32 %v2072_v57, 0.0  ;;  %v3340_v57 = vld [vmem:[%s4988_s8] sm:$0xff] }
 0x30d   : > { %v1888_v31 = vpop.f32.mrf.mxu0 }
 0x30e   : > { %v2007_v27 = vpop.f32.mrf.mxu1  ;;  %v2130_v40 = vpack.c.bf16 %v2104_v60, %v2103_v22  ;;  %v1889_v17 = vadd.f32 %v1888_v31, %v1800_v3  ;;  %v4796_v60 = vpop.f32.mrf.mxu2  ;;  %v1812_v3 = vadd.f32 %v1811_v15, %v4653_v50 }
 0x30f   : > { %2421 = vmatpush.bf16.msra.mxu3 %v3340_v57  ;;  %v1819_v31 = vpop.f32.mrf.mxu3 }
 0x310   : > { %1927 = vmatmul.bf16.gmra.mxu0 %v1465_v4  ;;  %2242 = vmatmul.bf16.gmra.mxu2 %v2130_v40  ;;  %v2008_v20 = vadd.f32 %v2007_v27, %v1889_v17 }
 0x311   : > { %3183 = vmatmul.msk.bf16.gmra.mxu1 %vm742_vm0, %v3432_v29 }
 0x312   : > { %v2073_v26 = vadd.f32 %v4665_v0, %v2008_v20 }
 0x314   : > { %v2105_v2 = vmax.f32 %v2073_v26, 0.0  ;;  %v1815_v26 = vadd.f32 %v1814_v14, %v4668_v47 }
 0x315   : > { %v1890_v37 = vpop.f32.mrf.mxu0 }
 0x316   : > { %v1891_v48 = vadd.f32 %v1890_v37, %v1802_v59  ;;  %v2009_v12 = vpop.f32.mrf.mxu1  ;;  %v4801_v20 = vpop.f32.mrf.mxu2 }
 0x318   : > { %v2010_v1 = vadd.f32 %v2009_v12, %v1891_v48  ;;  %v1821_v48 = vpop.f32.mrf.mxu3 }
 0x31a   : > { %v2074_v4 = vadd.f32 %v4665_v0, %v2010_v1 }
 0x31c   : > { %v2106_v52 = vmax.f32 %v2074_v4, 0.0 }
 0x31d   : > { %v1893_v44 = vpop.f32.mrf.mxu0 }
 0x31e   : > { %v2012_v11 = vpop.f32.mrf.mxu1  ;;  %v2131_v10 = vpack.c.bf16 %v2106_v52, %v2105_v2  ;;  %v1894_v53 = vadd.f32 %v1893_v44, %v1805_v36  ;;  %v4808_v44 = vld [vmem:[%s4987_s7] ss:$0 sm:$0xff] }
 0x320   : > { %1932 = vmatmul.bf16.gmra.mxu0 %v1468_v63  ;;  %2247 = vmatmul.bf16.gmra.mxu2 %v2131_v10  ;;  %v2013_v23 = vadd.f32 %v2012_v11, %v1894_v53  ;;  %v1824_v10 = vpop.f32.mrf.mxu3 }
 0x321   : > { %3184 = vmatmul.msk.bf16.gmra.mxu1 %vm742_vm0, %v3433_v5 }
 0x322   : > { %v2075_v46 = vadd.f32 %v4665_v0, %v2013_v23 }
 0x324   : > { %v2107_v56 = vmax.f32 %v2075_v46, 0.0 }
 0x325   : > { %v1895_v39 = vpop.f32.mrf.mxu0 }
 0x326   : > { %v1896_v51 = vadd.f32 %v1895_v39, %v1807_v33  ;;  %v2014_v7 = vpop.f32.mrf.mxu1  ;;  %v1820_v39 = vadd.f32 %v1819_v31, %v4688_v41 }
 0x328   : > { %v2015_v63 = vadd.f32 %v2014_v7, %v1896_v51 }
 0x32a   : > { %v2076_v35 = vadd.f32 %v4665_v0, %v2015_v63 }
 0x32c   : > { %v2108_v21 = vmax.f32 %v2076_v35, 0.0  ;;  %v1826_v35 = vpop.f32.mrf.mxu3 }
 0x32d   : > { %v1898_v54 = vpop.f32.mrf.mxu0 }
 0x32e   : > { %v2017_v34 = vpop.f32.mrf.mxu1  ;;  %v2132_v55 = vpack.c.bf16 %v2108_v21, %v2107_v56  ;;  %v1899_v22 = vadd.f32 %v1898_v54, %v1810_v38  ;;  %v1822_v56 = vadd.f32 %v1821_v48, %v4701_v16  ;;  %v1825_v16 = vadd.f32 %v1824_v10, %v4710_v24 }
 0x330   : > { %2252 = vmatmul.bf16.gmra.mxu2 %v2132_v55  ;;  %v2018_v27 = vadd.f32 %v2017_v34, %v1899_v22 }
 0x332   : > { %v2077_v18 = vadd.f32 %v4665_v0, %v2018_v27 }
 0x334   : > { %v2109_v28 = vmax.f32 %v2077_v18, 0.0  ;;  %v1829_v31 = vpop.f32.mrf.mxu3 }
 0x335   : > { %v1900_v40 = vpop.f32.mrf.mxu0 }
 0x336   : > { %v1901_v17 = vadd.f32 %v1900_v40, %v1812_v3  ;;  %v2019_v29 = vpop.f32.mrf.mxu1 }
 0x338   : > { %v2020_v19 = vadd.f32 %v2019_v29, %v1901_v17 }
 0x33a   : > { %v2078_v59 = vadd.f32 %v4665_v0, %v2020_v19 }
 0x33c   : > { %v2110_v37 = vmax.f32 %v2078_v59, 0.0 }
 0x33d   : > { %v1903_v12 = vpop.f32.mrf.mxu0 }
 0x33e   : > { %v2022_v1 = vpop.f32.mrf.mxu1  ;;  %v2133_v4 = vpack.c.bf16 %v2110_v37, %v2109_v28  ;;  %v1904_v50 = vadd.f32 %v1903_v12, %v1815_v26  ;;  %v1827_v26 = vadd.f32 %v1826_v35, %v4718_v43  ;;  %v1830_v43 = vadd.f32 %v1829_v31, %v4732_v9 }
 0x340   : > { %2257 = vmatmul.bf16.gmra.mxu2 %v2133_v4  ;;  %v2023_v2 = vadd.f32 %v2022_v1, %v1904_v50  ;;  %v1831_v4 = vpop.f32.mrf.mxu3 }
 0x342   : > { %v2079_v25 = vadd.f32 %v4665_v0, %v2023_v2 }
 0x343   : > { %v2218_v15 = vpop.f32.mrf.mxu2 }
 0x344   : > { %v2219_v14 = vadd.f32 %v4808_v44, %v2218_v15  ;;  %v2111_v62 = vmax.f32 %v2079_v25, 0.0 }
 0x345   : > { %v1905_v52 = vpop.f32.mrf.mxu0 }
 0x346   : > { %v1906_v36 = vadd.f32 %v1905_v52, %v1817_v6  ;;  %v2024_v11 = vpop.f32.mrf.mxu1  ;;  %v2298_v51 = vmax.f32 %v2219_v14, 0.0 }
 0x348   : > { %v2025_v47 = vadd.f32 %v2024_v11, %v1906_v36 }
 0x34a   : > { %v2080_v53 = vadd.f32 %v4665_v0, %v2025_v47 }
 0x34b   : > { %v2220_v5 = vpop.f32.mrf.mxu2 }
 0x34c   : > { %v2112_v8 = vmax.f32 %v2080_v53, 0.0  ;;  %v2221_v33 = vadd.f32 %v4808_v44, %v2220_v5 }
 0x34d   : > { %v1908_v23 = vpop.f32.mrf.mxu0 }
 0x34e   : > { %v2299_v7 = vmax.f32 %v2221_v33, 0.0  ;;  %v2027_v42 = vpop.f32.mrf.mxu1  ;;  %v2134_v46 = vpack.c.bf16 %v2112_v8, %v2111_v62  ;;  %v1909_v13 = vadd.f32 %v1908_v23, %v1820_v39  ;;  %v1834_v33 = vpop.f32.mrf.mxu3 }
 0x350   : > { %v2330_v63 = vpack.c.bf16 %v2299_v7, %v2298_v51  ;;  %2262 = vmatmul.bf16.gmra.mxu2 %v2134_v46  ;;  %v2028_v21 = vadd.f32 %v2027_v42, %v1909_v13  ;;  %v1832_v7 = vadd.f32 %v1831_v4, %v4738_v32  ;;  %v1835_v32 = vadd.f32 %v1834_v33, %v4747_v61 }
 0x352   : > { %2422 = vmatmul.bf16.vlgmr.msra.gmra.mxu3 %v2330_v63  ;;  %v2081_v55 = vadd.f32 %v4665_v0, %v2028_v21 }
 0x353   : > { %v2223_v49 = vpop.f32.mrf.mxu2 }
 0x354   : > { %v2224_v41 = vadd.f32 %v4808_v44, %v2223_v49  ;;  %v2113_v27 = vmax.f32 %v2081_v55, 0.0 }
 0x355   : > { %v1910_v54 = vpop.f32.mrf.mxu0 }
 0x356   : > { %v1911_v38 = vadd.f32 %v1910_v54, %v1822_v56  ;;  %v2029_v34 = vpop.f32.mrf.mxu1  ;;  %v2300_v18 = vmax.f32 %v2224_v41, 0.0  ;;  %v1836_v9 = vpop.f32.mrf.mxu3 }
 0x358   : > { %v2030_v57 = vadd.f32 %v2029_v34, %v1911_v38 }
 0x35a   : > { %v2082_v22 = vadd.f32 %v4665_v0, %v2030_v57 }
 0x35b   : > { %v2225_v3 = vpop.f32.mrf.mxu2 }
 0x35c   : > { %v2114_v40 = vmax.f32 %v2082_v22, 0.0  ;;  %v2226_v17 = vadd.f32 %v4808_v44, %v2225_v3 }
 0x35d   : > { %v1913_v29 = vpop.f32.mrf.mxu0 }
 0x35e   : > { %v2301_v19 = vmax.f32 %v2226_v17, 0.0  ;;  %v2032_v59 = vpop.f32.mrf.mxu1  ;;  %v2135_v28 = vpack.c.bf16 %v2114_v40, %v2113_v27  ;;  %v1914_v37 = vadd.f32 %v1913_v29, %v1825_v16  ;;  %v1839_v17 = vpop.f32.mrf.mxu3  ;;  %v1837_v16 = vadd.f32 %v1836_v9, %v4756_v45 }
 0x35f   : > { %v1840_v45 = vadd.f32 %v1839_v17, %v4767_v30 }
 0x360   : > { %2267 = vmatmul.bf16.gmra.mxu2 %v2135_v28  ;;  %v2331_v48 = vpack.c.bf16 %v2301_v19, %v2300_v18  ;;  %v2033_v1 = vadd.f32 %v2032_v59, %v1914_v37 }
 0x362   : > { %2427 = vmatmul.bf16.gmra.mxu3 %v2331_v48  ;;  %v2083_v2 = vadd.f32 %v4665_v0, %v2033_v1 }
 0x363   : > { %v2228_v12 = vpop.f32.mrf.mxu2 }
 0x364   : > { %v2229_v24 = vadd.f32 %v4808_v44, %v2228_v12  ;;  %v2115_v10 = vmax.f32 %v2083_v2, 0.0 }
 0x365   : > { %v1915_v50 = vpop.f32.mrf.mxu0 }
 0x366   : > { %v1916_v15 = vadd.f32 %v1915_v50, %v1827_v26  ;;  %v2034_v6 = vpop.f32.mrf.mxu1  ;;  %v2302_v53 = vmax.f32 %v2229_v24, 0.0 }
 0x368   : > { %v2035_v52 = vadd.f32 %v2034_v6, %v1916_v15  ;;  %v1841_v15 = vpop.f32.mrf.mxu3 }
 0x36a   : > { %v2084_v36 = vadd.f32 %v4665_v0, %v2035_v52 }
 0x36b   : > { %v2230_v11 = vpop.f32.mrf.mxu2 }
 0x36c   : > { %v2116_v25 = vmax.f32 %v2084_v36, 0.0  ;;  %v2231_v47 = vadd.f32 %v4808_v44, %v2230_v11 }
 0x36d   : > { %v1918_v14 = vpop.f32.mrf.mxu0 }
 0x36e   : > { %v2303_v5 = vmax.f32 %v2231_v47, 0.0  ;;  %v2037_v62 = vpop.f32.mrf.mxu1  ;;  %v2136_v8 = vpack.c.bf16 %v2116_v25, %v2115_v10  ;;  %v1919_v23 = vadd.f32 %v1918_v14, %v1830_v43  ;;  %v1842_v47 = vadd.f32 %v1841_v15, %v4782_v58 }
 0x370   : > { %2272 = vmatmul.bf16.gmra.mxu2 %v2136_v8  ;;  %v2332_v39 = vpack.c.bf16 %v2303_v5, %v2302_v53  ;;  %v2038_v42 = vadd.f32 %v2037_v62, %v1919_v23  ;;  %v1844_v62 = vpop.f32.mrf.mxu3 }
 0x371   : > { %v1845_v58 = vadd.f32 %v1844_v62, %v4796_v60 }
 0x372   : > { %2432 = vmatmul.bf16.gmra.mxu3 %v2332_v39  ;;  %v2085_v35 = vadd.f32 %v4665_v0, %v2038_v42 }
 0x373   : > { %v2233_v51 = vpop.f32.mrf.mxu2 }
 0x374   : > { %v2234_v56 = vadd.f32 %v4808_v44, %v2233_v51  ;;  %v2117_v38 = vmax.f32 %v2085_v35, 0.0 }
 0x375   : > { %v1920_v46 = vpop.f32.mrf.mxu0 }
 0x376   : > { %v1921_v63 = vadd.f32 %v1920_v46, %v1832_v7  ;;  %v2039_v13 = vpop.f32.mrf.mxu1  ;;  %v2304_v41 = vmax.f32 %v2234_v56, 0.0 }
 0x378   : > { %v2040_v49 = vadd.f32 %v2039_v13, %v1921_v63 }
 0x37a   : > { %v2086_v21 = vadd.f32 %v4665_v0, %v2040_v49 }
 0x37b   : > { %v2235_v54 = vpop.f32.mrf.mxu2 }
 0x37c   : > { %v2118_v34 = vmax.f32 %v2086_v21, 0.0  ;;  %v2236_v55 = vadd.f32 %v4808_v44, %v2235_v54  ;;  %v1846_v21 = vpop.f32.mrf.mxu3 }
 0x37d   : > { %v1923_v57 = vpop.f32.mrf.mxu0 }
 0x37e   : > { %v2305_v22 = vmax.f32 %v2236_v55, 0.0  ;;  %v2042_v31 = vpop.f32.mrf.mxu1  ;;  %v2137_v3 = vpack.c.bf16 %v2118_v34, %v2117_v38  ;;  %v1924_v27 = vadd.f32 %v1923_v57, %v1835_v32  ;;  %v1847_v38 = vadd.f32 %v1846_v21, %v4801_v20 }
 0x380   : > { %2277 = vmatmul.bf16.gmra.mxu2 %v2137_v3  ;;  %v2333_v40 = vpack.c.bf16 %v2305_v22, %v2304_v41  ;;  %v2043_v18 = vadd.f32 %v2042_v31, %v1924_v27 }
 0x382   : > { %2437 = vmatmul.bf16.gmra.mxu3 %v2333_v40  ;;  %v2087_v37 = vadd.f32 %v4665_v0, %v2043_v18 }
 0x383   : > { %v2238_v29 = vpop.f32.mrf.mxu2 }
 0x384   : > { %v2239_v61 = vadd.f32 %v4808_v44, %v2238_v29  ;;  %v2119_v1 = vmax.f32 %v2087_v37, 0.0 }
 0x385   : > { %v1925_v19 = vpop.f32.mrf.mxu0 }
 0x386   : > { %v1926_v59 = vadd.f32 %v1925_v19, %v1837_v16  ;;  %v2044_v28 = vpop.f32.mrf.mxu1  ;;  %v2306_v2 = vmax.f32 %v2239_v61, 0.0 }
 0x388   : > { %v2045_v48 = vadd.f32 %v2044_v28, %v1926_v59 }
 0x38a   : > { %v2088_v12 = vadd.f32 %v4665_v0, %v2045_v48 }
 0x38b   : > { %v2240_v26 = vpop.f32.mrf.mxu2 }
 0x38c   : > { %v2120_v4 = vmax.f32 %v2088_v12, 0.0  ;;  %v2241_v50 = vadd.f32 %v4808_v44, %v2240_v26 }
 0x38d   : > { %v1928_v6 = vpop.f32.mrf.mxu0 }
 0x38e   : > { %v2307_v52 = vmax.f32 %v2241_v50, 0.0  ;;  %v2047_v24 = vpop.f32.mrf.mxu1  ;;  %v2138_v36 = vpack.c.bf16 %v2120_v4, %v2119_v1  ;;  %v1929_v10 = vadd.f32 %v1928_v6, %v1840_v45 }
 0x390   : > { %v2334_v11 = vpack.c.bf16 %v2307_v52, %v2306_v2  ;;  %2282 = vmatmul.bf16.gmra.mxu2 %v2138_v36  ;;  %v2048_v14 = vadd.f32 %v2047_v24, %v1929_v10  ;;  %v4857_v52 = vld [vmem:[%s4989_s9] ss:$0 sm:$0xff] }
 0x392   : > { %2442 = vmatmul.bf16.gmra.mxu3 %v2334_v11  ;;  %v2089_v8 = vadd.f32 %v4665_v0, %v2048_v14 }
 0x393   : > { %v2243_v25 = vpop.f32.mrf.mxu2 }
 0x394   : > { %v2244_v30 = vadd.f32 %v4808_v44, %v2243_v25  ;;  %v2121_v51 = vmax.f32 %v2089_v8, 0.0 }
 0x395   : > { %v1930_v43 = vpop.f32.mrf.mxu0 }
 0x396   : > { %v1931_v53 = vadd.f32 %v1930_v43, %v1842_v47  ;;  %v2049_v5 = vpop.f32.mrf.mxu1  ;;  %v2308_v63 = vmax.f32 %v2244_v30, 0.0 }
 0x398   : > { %v2050_v33 = vadd.f32 %v2049_v5, %v1931_v53 }
 0x39a   : > { %v2090_v23 = vadd.f32 %v4665_v0, %v2050_v33 }
 0x39b   : > { %v2245_v39 = vpop.f32.mrf.mxu2 }
 0x39c   : > { %v2122_v7 = vmax.f32 %v2090_v23, 0.0  ;;  %v2246_v42 = vadd.f32 %v4808_v44, %v2245_v39 }
 0x39d   : > { %v1933_v46 = vpop.f32.mrf.mxu0 }
 0x39e   : > { %v2309_v13 = vmax.f32 %v2246_v42, 0.0  ;;  %v2052_v35 = vpop.f32.mrf.mxu1  ;;  %v2139_v49 = vpack.c.bf16 %v2122_v7, %v2121_v51  ;;  %v1934_v56 = vadd.f32 %v1933_v46, %v1845_v58 }
 0x3a0   : > { %v2335_v9 = vpack.c.bf16 %v2309_v13, %v2308_v63  ;;  %2287 = vmatmul.bf16.gmra.mxu2 %v2139_v49  ;;  %v2053_v34 = vadd.f32 %v2052_v35, %v1934_v56 }
 0x3a2   : > { %2447 = vmatmul.bf16.gmra.mxu3 %v2335_v9  ;;  %v2091_v41 = vadd.f32 %v4665_v0, %v2053_v34 }
 0x3a3   : > { %v2248_v54 = vpop.f32.mrf.mxu2 }
 0x3a4   : > { %v2249_v60 = vadd.f32 %v4808_v44, %v2248_v54  ;;  %v2123_v27 = vmax.f32 %v2091_v41, 0.0 }
 0x3a5   : > { %v1935_v55 = vpop.f32.mrf.mxu0 }
 0x3a6   : > { %v1936_v57 = vadd.f32 %v1935_v55, %v1847_v38  ;;  %v2054_v32 = vpop.f32.mrf.mxu1  ;;  %v2310_v29 = vmax.f32 %v2249_v60, 0.0 }
 0x3a8   : > { %v2055_v22 = vadd.f32 %v2054_v32, %v1936_v57 }
 0x3aa   : > { %v2092_v31 = vadd.f32 %v4665_v0, %v2055_v22 }
 0x3ab   : > { %v2250_v3 = vpop.f32.mrf.mxu2 }
 0x3ac   : > { %v2124_v40 = vmax.f32 %v2092_v31, 0.0  ;;  %v2251_v17 = vadd.f32 %v4808_v44, %v2250_v3 }
 0x3ae   : > { %v2311_v16 = vmax.f32 %v2251_v17, 0.0  ;;  %v2140_v18 = vpack.c.bf16 %v2124_v40, %v2123_v27 }
 0x3b0   : > { %v2336_v20 = vpack.c.bf16 %v2311_v16, %v2310_v29  ;;  %2292 = vmatmul.bf16.gmra.mxu2 %v2140_v18 }
 0x3b2   : > { %2452 = vmatmul.bf16.gmra.mxu3 %v2336_v20 }
 0x3b3   : > { %v2253_v19 = vpop.f32.mrf.mxu2 }
 0x3b4   : > { %v2254_v59 = vadd.f32 %v4808_v44, %v2253_v19 }
 0x3b6   : > { %v2312_v48 = vmax.f32 %v2254_v59, 0.0 }
 0x3bb   : > { %v2255_v28 = vpop.f32.mrf.mxu2 }
 0x3bc   : > { %v2256_v37 = vadd.f32 %v4808_v44, %v2255_v28 }
 0x3be   : > { %v2313_v61 = vmax.f32 %v2256_v37, 0.0 }
 0x3c0   : > { %v2337_v0 = vpack.c.bf16 %v2313_v61, %v2312_v48 }
 0x3c2   : > { %2457 = vmatmul.bf16.gmra.mxu3 %v2337_v0 }
 0x3c3   : > { %v2258_v12 = vpop.f32.mrf.mxu2 }
 0x3c4   : > { %v2259_v26 = vadd.f32 %v4808_v44, %v2258_v12 }
 0x3c6   : > { %v2314_v50 = vmax.f32 %v2259_v26, 0.0 }
 0x3cb   : > { %v2260_v1 = vpop.f32.mrf.mxu2 }
 0x3cc   : > { %v2261_v4 = vadd.f32 %v4808_v44, %v2260_v1 }
 0x3ce   : > { %v2315_v15 = vmax.f32 %v2261_v4, 0.0 }
 0x3d0   : > { %v2338_v6 = vpack.c.bf16 %v2315_v15, %v2314_v50 }
 0x3d2   : > { %2462 = vmatmul.bf16.gmra.mxu3 %v2338_v6 }
 0x3d3   : > { %v2263_v45 = vpop.f32.mrf.mxu2 }
 0x3d4   : > { %v2264_v24 = vadd.f32 %v4808_v44, %v2263_v45 }
 0x3d5   : > { %v2423_v2 = vpop.f32.mrf.mxu3 }
 0x3d6   : > { %v2424_v11 = vadd.f32 %v4857_v52, %v2423_v2  ;;  %v2316_v47 = vmax.f32 %v2264_v24, 0.0 }
 0x3d8   : > { %v2503_v53 = vmax.f32 %v2424_v11, 0.0 }
 0x3db   : > { %v2265_v36 = vpop.f32.mrf.mxu2 }
 0x3dc   : > { %v2266_v10 = vadd.f32 %v4808_v44, %v2265_v36 }
 0x3dd   : > { %v2425_v25 = vpop.f32.mrf.mxu3 }
 0x3de   : > { %v2317_v14 = vmax.f32 %v2266_v10, 0.0  ;;  %v2426_v43 = vadd.f32 %v4857_v52, %v2425_v25 }
 0x3e0   : > { %v2339_v5 = vpack.c.bf16 %v2317_v14, %v2316_v47  ;;  %v2504_v62 = vmax.f32 %v2426_v43, 0.0 }
 0x3e2   : > { %2467 = vmatmul.bf16.gmra.mxu3 %v2339_v5  ;;  %v4863_v8 = vpack.c.bf16 %v2504_v62, %v2503_v53 }
 0x3e3   : > { %v2268_v33 = vpop.f32.mrf.mxu2 }
 0x3e4   : > { %v2269_v23 = vadd.f32 %v4808_v44, %v2268_v33 }
 0x3e5   : > { %v2428_v30 = vpop.f32.mrf.mxu3 }
 0x3e6   : > { %v2429_v51 = vadd.f32 %v4857_v52, %v2428_v30  ;;  %v2318_v46 = vmax.f32 %v2269_v23, 0.0 }
 0x3e8   : > { %v2505_v13 = vmax.f32 %v2429_v51, 0.0 }
 0x3eb   : > { %v2270_v39 = vpop.f32.mrf.mxu2 }
 0x3ec   : > { %v2271_v7 = vadd.f32 %v4808_v44, %v2270_v39 }
 0x3ed   : > { %v2430_v42 = vpop.f32.mrf.mxu3 }
 0x3ee   : > { %v2319_v58 = vmax.f32 %v2271_v7, 0.0  ;;  %v2431_v63 = vadd.f32 %v4857_v52, %v2430_v42 }
 0x3f0   : > { %v2340_v35 = vpack.c.bf16 %v2319_v58, %v2318_v46  ;;  %v2506_v49 = vmax.f32 %v2431_v63, 0.0 }
 0x3f2   : > { %2472 = vmatmul.bf16.gmra.mxu3 %v2340_v35  ;;  %v4869_v9 = vpack.c.bf16 %v2506_v49, %v2505_v13 }
 0x3f3   : > { %v2273_v56 = vpop.f32.mrf.mxu2 }
 0x3f4   : > { %v2274_v54 = vadd.f32 %v4808_v44, %v2273_v56 }
 0x3f5   : > { %v2433_v21 = vpop.f32.mrf.mxu3 }
 0x3f6   : > { %v2434_v34 = vadd.f32 %v4857_v52, %v2433_v21  ;;  %v2320_v32 = vmax.f32 %v2274_v54, 0.0 }
 0x3f8   : > { %v2507_v60 = vmax.f32 %v2434_v34, 0.0 }
 0x3fb   : > { %v2275_v38 = vpop.f32.mrf.mxu2 }
 0x3fc   : > { %v2276_v55 = vadd.f32 %v4808_v44, %v2275_v38 }
 0x3fd   : > { %v2435_v57 = vpop.f32.mrf.mxu3 }
 0x3fe   : > { %v2321_v41 = vmax.f32 %v2276_v55, 0.0  ;;  %v2436_v22 = vadd.f32 %v4857_v52, %v2435_v57 }
 0x400   : > { %v2341_v31 = vpack.c.bf16 %v2321_v41, %v2320_v32  ;;  %v2508_v3 = vmax.f32 %v2436_v22, 0.0 }
 0x402   : > { %2477 = vmatmul.bf16.gmra.mxu3 %v2341_v31  ;;  %v4875_v27 = vpack.c.bf16 %v2508_v3, %v2507_v60 }
 0x403   : > { %v2278_v40 = vpop.f32.mrf.mxu2 }
 0x404   : > { %v2279_v29 = vadd.f32 %v4808_v44, %v2278_v40 }
 0x405   : > { %v2438_v17 = vpop.f32.mrf.mxu3 }
 0x406   : > { %v2439_v18 = vadd.f32 %v4857_v52, %v2438_v17  ;;  %v2322_v59 = vmax.f32 %v2279_v29, 0.0 }
 0x408   : > { %v2509_v48 = vmax.f32 %v2439_v18, 0.0 }
 0x40b   : > { %v2280_v16 = vpop.f32.mrf.mxu2 }
 0x40c   : > { %v2281_v20 = vadd.f32 %v4808_v44, %v2280_v16 }
 0x40d   : > { %v2440_v19 = vpop.f32.mrf.mxu3 }
 0x40e   : > { %v2323_v28 = vmax.f32 %v2281_v20, 0.0  ;;  %v2441_v37 = vadd.f32 %v4857_v52, %v2440_v19 }
 0x410   : > { %v2342_v61 = vpack.c.bf16 %v2323_v28, %v2322_v59  ;;  %v2510_v0 = vmax.f32 %v2441_v37, 0.0 }
 0x412   : > { %2482 = vmatmul.bf16.gmra.mxu3 %v2342_v61  ;;  %v4881_v12 = vpack.c.bf16 %v2510_v0, %v2509_v48 }
 0x413   : > { %v2283_v26 = vpop.f32.mrf.mxu2 }
 0x414   : > { %v2284_v4 = vadd.f32 %v4808_v44, %v2283_v26 }
 0x415   : > { %v2443_v1 = vpop.f32.mrf.mxu3 }
 0x416   : > { %v2444_v15 = vadd.f32 %v4857_v52, %v2443_v1  ;;  %v2324_v2 = vmax.f32 %v2284_v4, 0.0 }
 0x418   : > { %v2511_v11 = vmax.f32 %v2444_v15, 0.0 }
 0x41b   : > { %v2285_v50 = vpop.f32.mrf.mxu2 }
 0x41c   : > { %v2286_v6 = vadd.f32 %v4808_v44, %v2285_v50 }
 0x41d   : > { %v2445_v45 = vpop.f32.mrf.mxu3 }
 0x41e   : > { %v2325_v24 = vmax.f32 %v2286_v6, 0.0  ;;  %v2446_v36 = vadd.f32 %v4857_v52, %v2445_v45 }
 0x420   : > { %v2343_v10 = vpack.c.bf16 %v2325_v24, %v2324_v2  ;;  %v2512_v25 = vmax.f32 %v2446_v36, 0.0 }
 0x422   : > { %v2539_v47 = vpack.c.bf16 %v2512_v25, %v2511_v11  ;;  %2487 = vmatmul.bf16.gmra.mxu3 %v2343_v10 }
 0x423   : > { %v2288_v14 = vpop.f32.mrf.mxu2 }
 0x424   : > { %v2289_v53 = vadd.f32 %v4808_v44, %v2288_v14 }
 0x425   : > { %v2448_v43 = vpop.f32.mrf.mxu3 }
 0x426   : > { %v2326_v30 = vmax.f32 %v2289_v53, 0.0  ;;  %v2449_v40 = vadd.f32 %v4857_v52, %v2448_v43 }
 0x428   : > { %v2513_v20 = vmax.f32 %v2449_v40, 0.0 }
 0x42b   : > { %v2290_v5 = vpop.f32.mrf.mxu2 }
 0x42c   : > { %v2291_v62 = vadd.f32 %v4808_v44, %v2290_v5 }
 0x42d   : > { %v2450_v33 = vpop.f32.mrf.mxu3 }
 0x42e   : > { %v2327_v23 = vmax.f32 %v2291_v62, 0.0  ;;  %v2451_v31 = vadd.f32 %v4857_v52, %v2450_v33 }
 0x430   : > { %v2344_v39 = vpack.c.bf16 %v2327_v23, %v2326_v30  ;;  %v2514_v16 = vmax.f32 %v2451_v31, 0.0  ;;  %v2579_v31 = vstv %s2578_s3  ;;  %s2675_s3 = scalar_lea.hbm %s4992_s12, %s3348_s18  ;;  %s3484_s18 = scalar_lea.hbm %s4992_s12, 8 }
 0x431   : > { %s2679_s21 = sshll.u32 %s2675_s3, 4  ;;  %s2680_s21 = int_to_ptr.hbm [resolvable:$true] %s2679_s21 }
 0x432   : > { %2492 = vmatmul.bf16.gmra.mxu3 %v2344_v39  ;;  %v2540_v28 = vpack.c.bf16 %v2514_v16, %v2513_v20  ;;  %s3478_s13 = sshra.s32 %s2680_s21, 4  ;;  %s3479_s13 = int_to_ptr.hbm [resolvable:$true] %s3478_s13 }
 0x433   : > { %v2293_v51 = vpop.f32.mrf.mxu2  ;;  %s3480_s30 = scalar_lea.hbm %s3479_s13, 4  ;;  %p3485_p4 = scmp.lt.s32.totalorder %s3479_s13, %s4992_s12 }
 0x434   : > { %v2294_v42 = vadd.f32 %v4808_v44, %v2293_v51  ;;  %p3481_p1 = scmp.ne.s32.totalorder %s3479_s13, %s3480_s30  ;;  %p3486_p7 = scmp.lt.s32.totalorder %s3484_s18, %s3480_s30 }
 0x435   : > { %v2453_v7 = vpop.f32.mrf.mxu3 }
 0x436   : > { %v2328_v13 = vmax.f32 %v2294_v42, 0.0  ;;  %v2454_v41 = vadd.f32 %v4857_v52, %v2453_v7  ;;  %p3482_p2 = pnand %p3481_p1, %p3641_p5  ;;  %p3487_p8 = por %p3486_p7, %p3485_p4 }
 0x438   : > { %v2515_v60 = vmax.f32 %v2454_v41, 0.0  ;;  %p3483_p3 = pneg %p3482_p2 }
 0x43a   : > { %p3488_p9 = pnand %p3487_p8, %p3483_p3 }
 0x43b   : > { %v2295_v46 = vpop.f32.mrf.mxu2 }
 0x43c   : > { %v2296_v58 = vadd.f32 %v4808_v44, %v2295_v46 }
 0x43d   : > { %v2455_v63 = vpop.f32.mrf.mxu3 }
 0x43e   : > { %v2329_v35 = vmax.f32 %v2296_v58, 0.0  ;;  %v2456_v57 = vadd.f32 %v4857_v52, %v2455_v63 }
 0x440   : > { %v2345_v49 = vpack.c.bf16 %v2329_v35, %v2328_v13  ;;  %v2516_v22 = vmax.f32 %v2456_v57, 0.0 }
 0x442   : > { %2497 = vmatmul.bf16.gmra.mxu3 %v2345_v49  ;;  %v2541_v3 = vpack.c.bf16 %v2516_v22, %v2515_v60  ;;  %v2551_v22 = vld [vmem:[%s4990_s10] sm:$0xf] }
 0x445   : > { %v2458_v56 = vpop.f32.mrf.mxu3 }
 0x446   : > { %v2459_v21 = vadd.f32 %v4857_v52, %v2458_v56 }
 0x448   : > { %v2517_v34 = vmax.f32 %v2459_v21, 0.0 }
 0x44d   : > { %v2460_v54 = vpop.f32.mrf.mxu3 }
 0x44e   : > { %v2461_v38 = vadd.f32 %v4857_v52, %v2460_v54 }
 0x450   : > { %v2518_v55 = vmax.f32 %v2461_v38, 0.0 }
 0x452   : > { %v2542_v32 = vpack.c.bf16 %v2518_v55, %v2517_v34 }
 0x454   : > { %2552 = vmatpush.bf16.xpose.msrb.mxu0 %v2542_v32 }
 0x455   : > { %v2463_v44 = vpop.f32.mrf.mxu3 }
 0x456   : > { %v2464_v17 = vadd.f32 %v4857_v52, %v2463_v44 }
 0x458   : > { %v2519_v19 = vmax.f32 %v2464_v17, 0.0 }
 0x45c   : > { %2553 = vmatpush.bf16.xpose.msrb.mxu0 %v2541_v3 }
 0x45d   : > { %v2465_v29 = vpop.f32.mrf.mxu3 }
 0x45e   : > { %v2466_v18 = vadd.f32 %v4857_v52, %v2465_v29 }
 0x460   : > { %v2520_v59 = vmax.f32 %v2466_v18, 0.0 }
 0x462   : > { %v4899_v37 = vpack.c.bf16 %v2520_v59, %v2519_v19 }
 0x464   : > { %2554 = vmatpush.bf16.xpose.msrb.mxu0 %v2540_v28 }
 0x465   : > { %v2468_v48 = vpop.f32.mrf.mxu3 }
 0x466   : > { %v2469_v61 = vadd.f32 %v4857_v52, %v2468_v48 }
 0x468   : > { %v2521_v1 = vmax.f32 %v2469_v61, 0.0 }
 0x46c   : > { %2555 = vmatpush.bf16.xpose.msrb.mxu0 %v2539_v47 }
 0x46d   : > { %v2470_v0 = vpop.f32.mrf.mxu3 }
 0x46e   : > { %v2471_v26 = vadd.f32 %v4857_v52, %v2470_v0 }
 0x470   : > { %v2522_v4 = vmax.f32 %v2471_v26, 0.0 }
 0x472   : > { %v2544_v50 = vpack.c.bf16 %v2522_v4, %v2521_v1 }
 0x474   : > { %2556 = vmatpush.bf16.xpose.msrb.mxu0 %v4881_v12 }
 0x475   : > { %v2473_v15 = vpop.f32.mrf.mxu3 }
 0x476   : > { %v2474_v6 = vadd.f32 %v4857_v52, %v2473_v15 }
 0x478   : > { %v2523_v24 = vmax.f32 %v2474_v6, 0.0 }
 0x47c   : > { %2557 = vmatpush.bf16.xpose.msrb.mxu0 %v4875_v27 }
 0x47d   : > { %v2475_v45 = vpop.f32.mrf.mxu3 }
 0x47e   : > { %v2476_v2 = vadd.f32 %v4857_v52, %v2475_v45 }
 0x480   : > { %v2524_v36 = vmax.f32 %v2476_v2, 0.0 }
 0x482   : > { %v2545_v11 = vpack.c.bf16 %v2524_v36, %v2523_v24 }
 0x484   : > { %2558 = vmatpush.bf16.xpose.msrb.mxu0 %v4869_v9 }
 0x485   : > { %v2478_v10 = vpop.f32.mrf.mxu3 }
 0x486   : > { %v2479_v25 = vadd.f32 %v4857_v52, %v2478_v10 }
 0x488   : > { %v2525_v14 = vmax.f32 %v2479_v25, 0.0 }
 0x48c   : > { %2559 = vmatpush.bf16.xpose.msrb.mxu0 %v4863_v8 }
 0x48d   : > { %v2480_v47 = vpop.f32.mrf.mxu3 }
 0x48e   : > { %v2481_v12 = vadd.f32 %v4857_v52, %v2480_v47 }
 0x490   : > { %v2526_v43 = vmax.f32 %v2481_v12, 0.0  ;;  %v2656_v12 = vlaneseq }
 0x492   : > { %v2546_v53 = vpack.c.bf16 %v2526_v43, %v2525_v14  ;;  %vm4928_vm10 = vcmp.lt.s32.totalorder %v2656_v12, 256 }
 0x493   : > { %2560 = vmatmul.bf16.vlgmr.msrb.gmra.mxu0 %v2551_v22 }
 0x495   : > { %v2483_v27 = vpop.f32.mrf.mxu3 }
 0x496   : > { %v2484_v5 = vadd.f32 %v4857_v52, %v2483_v27 }
 0x498   : > { %v2527_v30 = vmax.f32 %v2484_v5, 0.0 }
 0x49d   : > { %v2485_v62 = vpop.f32.mrf.mxu3 }
 0x49e   : > { %v2486_v33 = vadd.f32 %v4857_v52, %v2485_v62 }
 0x4a0   : > { %v2528_v23 = vmax.f32 %v2486_v33, 0.0 }
 0x4a2   : > { %v2547_v9 = vpack.c.bf16 %v2528_v23, %v2527_v30 }
 0x4a5   : > { %v2488_v39 = vpop.f32.mrf.mxu3 }
 0x4a6   : > { %v2489_v57 = vadd.f32 %v4857_v52, %v2488_v39 }
 0x4a8   : > { %v2529_v41 = vmax.f32 %v2489_v57, 0.0 }
 0x4ad   : > { %v2490_v51 = vpop.f32.mrf.mxu3 }
 0x4ae   : > { %v2491_v34 = vadd.f32 %v4857_v52, %v2490_v51 }
 0x4b0   : > { %v2530_v32 = vmax.f32 %v2491_v34, 0.0 }
 0x4b2   : > { %v2548_v44 = vpack.c.bf16 %v2530_v32, %v2529_v41 }
 0x4b5   : > { %v2493_v7 = vpop.f32.mrf.mxu3 }
 0x4b6   : > { %v2494_v21 = vadd.f32 %v4857_v52, %v2493_v7 }
 0x4b8   : > { %v2531_v38 = vmax.f32 %v2494_v21, 0.0 }
 0x4bd   : > { %v2495_v42 = vpop.f32.mrf.mxu3 }
 0x4be   : > { %v2496_v49 = vadd.f32 %v4857_v52, %v2495_v42 }
 0x4c0   : > { %v2532_v54 = vmax.f32 %v2496_v49, 0.0 }
 0x4c2   : > { %v2549_v55 = vpack.c.bf16 %v2532_v54, %v2531_v38 }
 0x4c5   : > { %v2498_v8 = vpop.f32.mrf.mxu3 }
 0x4c6   : > { %v2499_v46 = vadd.f32 %v4857_v52, %v2498_v8  ;;  %v2620_v8 = vld [vmem:[%s448_s17] sm:$0x3] }
 0x4c7   : > { %v2642_v49 = vsub.f32 1.0, %v2620_v8 }
 0x4c8   : > { %v2533_v13 = vmax.f32 %v2499_v46, 0.0 }
 0x4cd   : > { %v2500_v58 = vpop.f32.mrf.mxu3 }
 0x4ce   : > { %v2501_v63 = vadd.f32 %v4857_v52, %v2500_v58 }
 0x4d0   : > { %v2534_v35 = vmax.f32 %v2501_v63, 0.0 }
 0x4d2   : > { %v2550_v56 = vpack.c.bf16 %v2534_v35, %v2533_v13 }
 0x4d4   : > { %2565 = vmatpush.bf16.xpose.msrb.mxu1 %v2550_v56 }
 0x4dc   : > { %2566 = vmatpush.bf16.xpose.msrb.mxu1 %v2549_v55 }
 0x4e4   : > { %2567 = vmatpush.bf16.xpose.msrb.mxu1 %v2548_v44 }
 0x4ec   : > { %2568 = vmatpush.bf16.xpose.msrb.mxu1 %v2547_v9 }
 0x4f4   : > { %2569 = vmatpush.bf16.xpose.msrb.mxu1 %v2546_v53 }
 0x4fc   : > { %2570 = vmatpush.bf16.xpose.msrb.mxu1 %v2545_v11 }
 0x504   : > { %2571 = vmatpush.bf16.xpose.msrb.mxu1 %v2544_v50 }
 0x50c   : > { %2572 = vmatpush.bf16.xpose.msrb.mxu1 %v4899_v37 }
 0x510   : > { %v2561_v60 = vpop.f32.mrf.mxu0 }
 0x511   : > { %v2580_v3 = vadd.f32 %v2579_v31, %v2561_v60 }
 0x513   : > { %2573 = vmatmul.bf16.vlgmr.msrb.gmra.mxu1 %v2551_v22  ;;  %v3249_v40 = vmul.f32 -1.442695, %v2580_v3 }
 0x515   : > { %3404 = vpow2.f32 %v3249_v40 }
 0x518   : > { %v2563_v52 = vpop.f32.mrf.mxu0 }
 0x51b   : > { %v3405_v17 = vpop.eup %3404 }
 0x51c   : > { %v2588_v29 = vadd.f32 1.0, %v3405_v17 }
 0x51e   : > { %3406 = vrcp.f32 %v2588_v29  ;;  %vm2595_vm1 = vweird.f32 %v2588_v29  ;;  %v2601_v26 = vand.u32 2147483648, %v2588_v29  ;;  %v2599_v4 = vand.u32 2147483647, %v2588_v29 }
 0x520   : > { %v2602_v50 = vor.u32 1.1754944e-38, %v2601_v26  ;;  %vm2600_vm4 = vcmp.eq.f32.partialorder %v2599_v4, 8.507059e+37 }
 0x524   : > { %v3407_v18 = vpop.eup %3406 }
 0x525   : > { %v2591_v59 = vmul.f32 %v3407_v18, %v2588_v29  ;;  %vm2596_vm2 = vweird.f32 %v3407_v18 }
 0x526   : > { %vm2597_vm3 = vmor %vm2595_vm1, %vm2596_vm2 }
 0x527   : > { %v2592_v28 = vsub.f32 1.0, %v2591_v59 }
 0x529   : > { %v2593_v0 = vmul.f32 %v3407_v18, %v2592_v28 }
 0x52b   : > { %v2594_v1 = vadd.f32 %v3407_v18, %v2593_v0 }
 0x52d   : > { %v2598_v6 = vsel %vm2597_vm3, %v3407_v18, %v2594_v1 }
 0x52e   : > { %v2603_v24 = vsel %vm2600_vm4, %v2602_v50, %v2598_v6 }
 0x52f   : > { %v2627_v25 = vsub.f32 1.0, %v2603_v24 }
 0x590   : > { %v2574_v16 = vpop.f32.mrf.mxu1 }
 0x591   : > { %v2581_v20 = vadd.f32 %v2579_v31, %v2574_v16 }
 0x593   : > { %v3250_v19 = vmul.f32 -1.442695, %v2581_v20 }
 0x595   : > { %3408 = vpow2.f32 %v3250_v19 }
 0x598   : > { %v2576_v48 = vpop.f32.mrf.mxu1 }
 0x59b   : > { %v3409_v37 = vpop.eup %3408 }
 0x59c   : > { %v2589_v61 = vadd.f32 1.0, %v3409_v37 }
 0x59e   : > { %3410 = vrcp.f32 %v2589_v61  ;;  %v2616_v36 = vand.u32 2147483648, %v2589_v61  ;;  %v2614_v10 = vand.u32 2147483647, %v2589_v61  ;;  %vm2610_vm6 = vweird.f32 %v2589_v61 }
 0x59f   : > { %3412 = vlog2.f32 %v2603_v24 }
 0x5a0   : > { %v2617_v14 = vor.u32 1.1754944e-38, %v2616_v36  ;;  %vm2615_vm8 = vcmp.eq.f32.partialorder %v2614_v10, 8.507059e+37  ;;  %3414 = vlog2.f32 %v2627_v25 }
 0x5a4   : > { %v3411_v15 = vpop.eup %3410 }
 0x5a5   : > { %v2606_v45 = vmul.f32 %v3411_v15, %v2589_v61  ;;  %vm2611_vm5 = vweird.f32 %v3411_v15  ;;  %v3413_v30 = vpop.eup %3412 }
 0x5a6   : > { %vm2612_vm7 = vmor %vm2610_vm6, %vm2611_vm5  ;;  %v3415_v23 = vpop.eup %3414  ;;  %v2622_v39 = vmul.f32 0.6931472, %v3413_v30 }
 0x5a7   : > { %v2607_v2 = vsub.f32 1.0, %v2606_v45  ;;  %v2630_v42 = vmul.f32 0.6931472, %v3415_v23 }
 0x5a8   : > { %v2625_v63 = vmax.f32 %v2622_v39, -100.0 }
 0x5a9   : > { %v2608_v11 = vmul.f32 %v3411_v15, %v2607_v2  ;;  %v2633_v56 = vmax.f32 %v2630_v42, -100.0 }
 0x5ab   : > { %v2609_v47 = vadd.f32 %v3411_v15, %v2608_v11 }
 0x5ad   : > { %v2613_v43 = vsel %vm2612_vm7, %v3411_v15, %v2609_v47 }
 0x5ae   : > { %v2618_v53 = vsel %vm2615_vm8, %v2617_v14, %v2613_v43 }
 0x5af   : > { %3416 = vlog2.f32 %v2618_v53  ;;  %v2628_v27 = vsub.f32 1.0, %v2618_v53  ;;  %v2653_v5 = vrot.slane %v2618_v53, 7 }
 0x5b1   : > { %3418 = vlog2.f32 %v2628_v27  ;;  %v2654_v33 = vsel %vm2638_vm9, %v2603_v24, %v2653_v5 }
 0x5b2   : > { %2660 = vst.msk [vmem:[%s4933_s22] ss:$2 sm:$0x3] %vm4928_vm10, %v2654_v33 }
 0x5b5   : > { %v3417_v9 = vpop.eup %3416 }
 0x5b6   : > { %v2624_v51 = vmul.f32 0.6931472, %v3417_v9 }
 0x5b7   : > { %v3419_v7 = vpop.eup %3418 }
 0x5b8   : > { %v2626_v46 = vmax.f32 %v2624_v51, -100.0  ;;  %v2632_v58 = vmul.f32 0.6931472, %v3419_v7 }
 0x5ba   : > { %v2634_v13 = vmax.f32 %v2632_v58, -100.0  ;;  %v2637_v35 = vrot.slane %v2626_v46, 7 }
 0x5bc   : > { %v2639_v21 = vsel %vm2638_vm9, %v2625_v63, %v2637_v35  ;;  %v2645_v54 = vrot.slane %v2634_v13, 7 }
 0x5bd   : > { %v2641_v34 = vmul.f32 %v2639_v21, %v2620_v8 }
 0x5be   : > { %v2646_v38 = vsel %vm2638_vm9, %v2633_v56, %v2645_v54 }
 0x5bf   : > { %v2648_v55 = vmul.f32 %v2646_v38, %v2642_v49 }
 0x5c1   : > { %v2649_v57 = vadd.f32 %v2648_v55, %v2641_v34 }
 0x5c3   : > { %v2650_v32 = vsub.f32 0.0, %v2649_v57 }
 0x5c5   : > { %3251 = vst.msk [vmem:[%s4933_s22 + $0x1] ss:$2 sm:$0x3] %vm4928_vm10, %v2650_v32 }
 0x5c6   : > { %3491 = shalt.err (!%p3488_p9)
}
 0x5c7   : > { %3353 = dma.vmem_to_hbm [thread:$0]  (%p3641_p5), %s2678_s20, 64, %s2680_s21, %s2664_s11  }
 0x5c8 PF: > { %p3365_p10 = scmp.ge.s32.totalorder %s3530_s26, 2  ;;  %s2691_s27 = sand.u32 1, %s3518_s23  }
 0x5c9   : > { %s2692_s22 = scalar_lea.sflag [#allocation5], %s2691_s27 }
 0x5ca   : > { %p3360_p11 = pnand %p3365_p10, %p3645_p6 }
 0x5cc   : > { %p3361_p12 = pneg %p3360_p11 }
 0x5ce   : > { %3513 = dma.done.wait (%p3361_p12), %s2692_s22, 64  }
 0x5cf   : > { %3515 = vsyncadd (%p3361_p12), %s2692_s22, 4294967232  ;;  %s5087_s3 = sld [smem:[#allocation9_spill]]  ;;  %p24_p13 = scmp.ge.s32.totalorder %s3628_s28, 4  }
 0x5d0   : > { %s5088_s23 = smov %s3522_s24  ;;  %s5089_s24 = smov %s3526_s25 }
 0x5d1   : > { %s5091_s26 = smov %s3628_s28  ;;  %26 = sbr.rel (!%p24_p13) target bundleno = 7 (0x7), region = 112 }
 0x5d5   : > { %s5090_s25 = smov %s5087_s3 }
 0x5d6   :  { %2698 = vsyncpa [#allocation4], 1 }
 0x5d7   :  { %2700 = vsyncpa [#allocation4 + $0x1], 1 }
 0x5d8   :  { %2701 = vsyncpa [#allocation5], 1 }
 0x5d9   :  { %2703 = vsyncpa [#allocation5 + $0x1], 1 }

</bundles_post_ra>
